<compile_context>
chip_gen: v6e
topology: v6e:2x2x1
jax: 0.10.0
libtpu: 0.0.40
codegen_flags: <defaults>
</compile_context>

<pallas_src>
import functools
import math

import numpy as np
import jax
import jax.numpy as jnp
from jax import lax
from jax.experimental import pallas as pl
from jax.experimental.pallas import tpu as pltpu

KSIZE = 3
BN_EPS = 1e-5
_HI = lax.Precision.HIGHEST


def _apply_act(x, activation):
    if activation == "relu":
        return jnp.maximum(x, 0.0)
    if activation == "leaky_relu":
        return jnp.where(x >= 0.0, x, 0.2 * x)
    if activation == "swish":
        return x * jax.nn.sigmoid(x)
    raise ValueError("Incorrect activation!")


def _conv_same_geometry(H, W):
    """Static lane shifts + 0/1 validity masks for a 3x3 stride-1 'same' conv on
    (y, x)-flattened lanes (read offset (dy-1)*W + (dx-1))."""
    HW = H * W
    yy = np.arange(HW) // W
    xx = np.arange(HW) % W
    shifts, masks = [], []
    for dy in range(KSIZE):
        for dx in range(KSIZE):
            off = (dy - 1) * W + (dx - 1)
            shifts.append(int((-off) % HW))
            v = ((yy + dy - 1 >= 0) & (yy + dy - 1 < H) &
                 (xx + dx - 1 >= 0) & (xx + dx - 1 < W))
            masks.append(v.astype(np.float32))
    return tuple(shifts), np.stack(masks, axis=0)          # (9, HW)


def _conv_transpose_geometry(H, W):
    """Static lane shifts + masks for the 3x3 transposed conv evaluated on the
    pruned output grid from the stride-dilated input (read offset -(ky*W+kx))."""
    HW = H * W
    yy = np.arange(HW) // W
    xx = np.arange(HW) % W
    shifts, masks = [], []
    for ky in range(KSIZE):
        for kx in range(KSIZE):
            shifts.append(int((ky * W + kx) % HW))
            v = (yy >= ky) & (xx >= kx)
            masks.append(v.astype(np.float32))
    return tuple(shifts), np.stack(masks, axis=0)          # (9, HW)


def _decoder_block_kernel(xd_ref, cat_ref, wt_ref, w1_ref, w2_ref,
                          bt_ref, b1_ref, b2_ref,
                          c1_ref, cb1_ref, cb2_ref,
                          mtr_ref, msm_ref, out_ref,
                          *, shifts_tr, shifts_sm, activation):
    """One image of the DecoderBlock forward, channel-major (C, Ho*Wo)."""

    def im2col(x, shifts, mask_ref):
        taps = []
        for t in range(KSIZE * KSIZE):
            s = shifts[t]
            xt = pltpu.roll(x, s, axis=1) if s else x       # XLU lane rotate
            taps.append(xt * mask_ref[t:t + 1, :])          # boundary mask (VPU)
        # (9*C, HW) contraction slab, bf16 feed for the MXU (f32 accumulation).
        return jnp.concatenate(taps, axis=0).astype(jnp.bfloat16)

    # ---- ConvTranspose2d (BN1 scale folded into weights) + shift + act + emb1 ----
    a_t = im2col(xd_ref[0], shifts_tr, mtr_ref)
    h1 = jnp.dot(wt_ref[...], a_t, preferred_element_type=jnp.float32)
    h1 = _apply_act(h1 + bt_ref[...], activation) + c1_ref[0]

    # ---- prune is implicit (only the pruned grid is ever computed); concat skip ----
    x2 = jnp.concatenate([h1, cat_ref[0]], axis=0)          # (2*cout, HW)

    # ---- ConvBlock conv1 + BN + act + emb1 ----
    a1 = im2col(x2, shifts_sm, msm_ref)
    h2 = jnp.dot(w1_ref[...], a1, preferred_element_type=jnp.float32)
    h2 = _apply_act(h2 + b1_ref[...], activation) + cb1_ref[0]

    # ---- ConvBlock conv2 + BN + act + emb2 ----
    a2 = im2col(h2, shifts_sm, msm_ref)
    h3 = jnp.dot(w2_ref[...], a2, preferred_element_type=jnp.float32)
    out_ref[0] = (_apply_act(h3 + b2_ref[...], activation)
                  + cb2_ref[0]).astype(out_ref.dtype)


def decoder_block_forward(input_nchw, concat_nchw, condition, params, *,
                          stride, activation):
    B, cin, Hi, Wi = input_nchw.shape
    cout = params["convt_w"].shape[1]
    Ho = (Hi - 1) * stride + 2          # pruned ConvTranspose2d output size
    Wo = (Wi - 1) * stride + 2
    HW = Ho * Wo
    assert concat_nchw.shape == (B, cout, Ho, Wo)

    cin_p = ((cin + 7) // 8) * 8        # pad convT input channels to sublane multiple

    # --- stride-dilated input on the (pruned) output grid, lane-flat per image ---
    xd = jnp.zeros((B, cin_p, Ho, Wo), jnp.float32)
    xd = xd.at[:, :cin,
               0:(Hi - 1) * stride + 1:stride,
               0:(Wi - 1) * stride + 1:stride].set(input_nchw.astype(jnp.float32))
    xd = xd.reshape(B, cin_p, HW)

    cat = concat_nchw.astype(jnp.float32).reshape(B, cout, HW)

    # --- fold BatchNorm (inference) into per-channel scale / shift ---
    def bn_fold(prefix):
        s = params[prefix + "_gamma"] / jnp.sqrt(params[prefix + "_var"] + BN_EPS)
        b = params[prefix + "_beta"] - params[prefix + "_mean"] * s
        return s, b

    st, bt = bn_fold("bn1")
    s1, b1 = bn_fold("cb_bn1")
    s2, b2 = bn_fold("cb_bn2")

    # transposed-conv weight (cin, cout, 3, 3) -> (cout, 9*cin_p), BN scale folded, bf16
    wt = jnp.transpose(params["convt_w"], (2, 3, 1, 0)).reshape(KSIZE * KSIZE, cout, cin)
    wt = jnp.pad(wt, ((0, 0), (0, 0), (0, cin_p - cin)))
    wt = jnp.transpose(wt, (1, 0, 2)).reshape(cout, KSIZE * KSIZE * cin_p)
    wt = (wt * st[:, None]).astype(jnp.bfloat16)

    # ConvBlock conv weights (cout, ci, 3, 3) -> (cout, 9*ci), BN scale folded, bf16
    def conv_mat(w, scale):
        co, ci = w.shape[:2]
        m = jnp.transpose(w, (2, 3, 0, 1)).reshape(KSIZE * KSIZE, co, ci)
        m = jnp.transpose(m, (1, 0, 2)).reshape(co, KSIZE * KSIZE * ci)
        return (m * scale[:, None]).astype(jnp.bfloat16)

    w1 = conv_mat(params["cb_conv1_w"], s1)
    w2 = conv_mat(params["cb_conv2_w"], s2)

    # --- condition embeddings: one tiny GEMM here, (B, cout, 1) columns to kernel ---
    cond = condition.astype(jnp.float32)

    def emb(wname, bname):
        c = jnp.dot(cond, params[wname].T, precision=_HI) + params[bname]   # (B, cout)
        return c.reshape(B, cout, 1)

    c1e = emb("emb1_w", "emb1_b")
    cb1e = emb("cb_emb1_w", "cb_emb1_b")
    cb2e = emb("cb_emb2_w", "cb_emb2_b")

    shifts_tr, m_tr = _conv_transpose_geometry(Ho, Wo)
    shifts_sm, m_sm = _conv_same_geometry(Ho, Wo)
    m_tr = jnp.asarray(m_tr)
    m_sm = jnp.asarray(m_sm)

    kernel = functools.partial(_decoder_block_kernel,
                               shifts_tr=shifts_tr, shifts_sm=shifts_sm,
                               activation=activation)

    def const_spec(shape):
        return pl.BlockSpec(shape, lambda b: (0,) * len(shape))

    img_spec = lambda c: pl.BlockSpec((1, c, HW), lambda b: (b, 0, 0))
    emb_spec = pl.BlockSpec((1, cout, 1), lambda b: (b, 0, 0))

    out = pl.pallas_call(
        kernel,
        out_shape=jax.ShapeDtypeStruct((B, cout, HW), jnp.float32),
        grid=(B,),
        in_specs=[
            img_spec(cin_p),                 # xd
            img_spec(cout),                  # skip (concat) tensor
            const_spec(wt.shape),            # folded ConvTranspose weight
            const_spec(w1.shape),            # folded conv1 weight
            const_spec(w2.shape),            # folded conv2 weight
            const_spec((cout, 1)),           # bt
            const_spec((cout, 1)),           # b1
            const_spec((cout, 1)),           # b2
            emb_spec, emb_spec, emb_spec,    # condition embeddings
            const_spec(tuple(m_tr.shape)),   # transposed-conv masks
            const_spec(tuple(m_sm.shape)),   # same-conv masks
        ],
        out_specs=pl.BlockSpec((1, cout, HW), lambda b: (b, 0, 0)),
        compiler_params=pltpu.CompilerParams(dimension_semantics=("parallel",)),
    )(xd, cat, wt, w1, w2,
      bt.reshape(cout, 1), b1.reshape(cout, 1), b2.reshape(cout, 1),
      c1e, cb1e, cb2e, m_tr, m_sm)

    # back to PyTorch's NCHW convention (pure reshape plumbing)
    return out.reshape(B, cout, Ho, Wo)


def init_params(key, cin, cout, classes):
    ks = jax.random.split(key, 6)

    def xavier(k, shape, fan_in, fan_out):
        bound = math.sqrt(6.0 / (fan_in + fan_out))
        return jax.random.uniform(k, shape, jnp.float32, -bound, bound)

    p = {
        # torch ConvTranspose2d weight layout: (in_channels, out_channels, kh, kw)
        "convt_w": xavier(ks[0], (cin, cout, KSIZE, KSIZE), cout * 9, cin * 9),
        # ConvBlock conv weights: (out, in, kh, kw)
        "cb_conv1_w": xavier(ks[1], (cout, 2 * cout, KSIZE, KSIZE), 2 * cout * 9, cout * 9),
        "cb_conv2_w": xavier(ks[2], (cout, cout, KSIZE, KSIZE), cout * 9, cout * 9),
    }
    for name in ("bn1", "cb_bn1", "cb_bn2"):
        p[name + "_gamma"] = jnp.ones((cout,), jnp.float32)
        p[name + "_beta"] = jnp.zeros((cout,), jnp.float32)
        p[name + "_mean"] = jnp.zeros((cout,), jnp.float32)
        p[name + "_var"] = jnp.ones((cout,), jnp.float32)
    for i, name in enumerate(("emb1", "cb_emb1", "cb_emb2")):
        p[name + "_w"] = jax.random.uniform(ks[3 + i], (cout, classes), jnp.float32, -0.1, 0.1)
        p[name + "_b"] = jnp.zeros((cout,), jnp.float32)
    return p


def reference(input_nchw, concat_nchw, cond, params, stride, activation):
    """Pure-JAX reference mirroring the PyTorch DecoderBlock.forward (BN eval mode)."""
    def conv_same(h, w):
        return lax.conv_general_dilated(
            h, w, (1, 1), ((1, 1), (1, 1)),
            dimension_numbers=("NCHW", "OIHW", "NCHW"), precision=_HI)

    def bn(h, prefix):
        g, b, m, v = (params[prefix + s][None, :, None, None]
                      for s in ("_gamma", "_beta", "_mean", "_var"))
        return (h - m) / jnp.sqrt(v + BN_EPS) * g + b

    def emb(name):
        return jnp.dot(cond, params[name + "_w"].T, precision=_HI) + params[name + "_b"]

    # ConvTranspose2d(k=3, stride, pad=0) == lhs-dilated conv with flipped kernel
    wtf = jnp.transpose(jnp.flip(params["convt_w"], (2, 3)), (1, 0, 2, 3))
    x = lax.conv_general_dilated(
        input_nchw, wtf, (1, 1), ((KSIZE - 1, KSIZE - 1), (KSIZE - 1, KSIZE - 1)),
        lhs_dilation=(stride, stride),
        dimension_numbers=("NCHW", "OIHW", "NCHW"), precision=_HI)
    x = _apply_act(bn(x, "bn1"), activation) + emb("emb1")[:, :, None, None]
    x = x[:, :, :-1, :-1]                                   # prune
    x = jnp.concatenate([x, concat_nchw], axis=1)           # skip connection
    x = _apply_act(bn(conv_same(x, params["cb_conv1_w"]), "cb_bn1"),
                   activation) + emb("cb_emb1")[:, :, None, None]
    x = _apply_act(bn(conv_same(x, params["cb_conv2_w"]), "cb_bn2"),
                   activation) + emb("cb_emb2")[:, :, None, None]
    return x


if __name__ == "__main__":
    B, cin, cout = 2, 4, 8
    Hi = Wi = 8
    stride = 2
    classes = 32
    activation = "relu"
    Ho = Wo = (Hi - 1) * stride + 2     # 16

    key = jax.random.PRNGKey(0)
    k1, k2, k3, k4 = jax.random.split(key, 4)
    x = jax.random.normal(k1, (B, cin, Hi, Wi), jnp.float32)          # NCHW like PyTorch
    skip = jax.random.normal(k2, (B, cout, Ho, Wo), jnp.float32)       # concat_tensor
    condition = jax.random.uniform(k3, (B, classes), jnp.float32)
    params = init_params(k4, cin, cout, classes)

    out = decoder_block_forward(x, skip, condition, params,
                                stride=stride, activation=activation)
    jax.block_until_ready(out)

    ref = reference(x, skip, condition, params, stride, activation)
    assert out.shape == (B, cout, Ho, Wo)
    max_err = float(jnp.max(jnp.abs(out - ref)))
    # bf16 MXU path with f32 accumulation -> compare at a bf16-appropriate tolerance
    assert jnp.allclose(out, ref, atol=2e-2, rtol=2e-2), f"mismatch (max abs err {max_err})"
    print("KERNEL_OK")
</pallas_src>

<mosaic_0001>
module attributes {stable_mosaic.version = 11 : i64} {
  func.func @_decoder_block_kernel(%arg0: i32, %arg1: memref<1x8x256xf32, #tpu.memory_space<vmem>>, %arg2: memref<1x8x256xf32, #tpu.memory_space<vmem>>, %arg3: memref<8x72xbf16, #tpu.memory_space<vmem>>, %arg4: memref<8x144xbf16, #tpu.memory_space<vmem>>, %arg5: memref<8x72xbf16, #tpu.memory_space<vmem>>, %arg6: memref<8x1xf32, #tpu.memory_space<vmem>>, %arg7: memref<8x1xf32, #tpu.memory_space<vmem>>, %arg8: memref<8x1xf32, #tpu.memory_space<vmem>>, %arg9: memref<1x8x1xf32, #tpu.memory_space<vmem>>, %arg10: memref<1x8x1xf32, #tpu.memory_space<vmem>>, %arg11: memref<1x8x1xf32, #tpu.memory_space<vmem>>, %arg12: memref<9x256xf32, #tpu.memory_space<vmem>>, %arg13: memref<9x256xf32, #tpu.memory_space<vmem>>, %arg14: memref<1x8x256xf32, #tpu.memory_space<vmem>>) attributes {dimension_semantics = [#tpu.dimension_semantics<parallel>], iteration_bounds = array<i64: 2>, scalar_prefetch = 0 : i64, scratch_operands = 0 : i64, tpu.core_type = #tpu.core_type<tc>, window_params = [{transform_indices = @transform_0, window_bounds = array<i64: 1, 8, 256>}, {transform_indices = @transform_1, window_bounds = array<i64: 1, 8, 256>}, {pipeline_mode = #tpu.pipeline_mode<synchronous>, transform_indices = @transform_2, window_bounds = array<i64: 8, 72>}, {pipeline_mode = #tpu.pipeline_mode<synchronous>, transform_indices = @transform_3, window_bounds = array<i64: 8, 144>}, {pipeline_mode = #tpu.pipeline_mode<synchronous>, transform_indices = @transform_4, window_bounds = array<i64: 8, 72>}, {pipeline_mode = #tpu.pipeline_mode<synchronous>, transform_indices = @transform_5, window_bounds = array<i64: 8, 1>}, {pipeline_mode = #tpu.pipeline_mode<synchronous>, transform_indices = @transform_6, window_bounds = array<i64: 8, 1>}, {pipeline_mode = #tpu.pipeline_mode<synchronous>, transform_indices = @transform_7, window_bounds = array<i64: 8, 1>}, {transform_indices = @transform_8, window_bounds = array<i64: 1, 8, 1>}, {transform_indices = @transform_9, window_bounds = array<i64: 1, 8, 1>}, {transform_indices = @transform_10, window_bounds = array<i64: 1, 8, 1>}, {pipeline_mode = #tpu.pipeline_mode<synchronous>, transform_indices = @transform_11, window_bounds = array<i64: 9, 256>}, {pipeline_mode = #tpu.pipeline_mode<synchronous>, transform_indices = @transform_12, window_bounds = array<i64: 9, 256>}, {transform_indices = @transform_13, window_bounds = array<i64: 1, 8, 256>}]} {
    %c0 = arith.constant 0 : index
    %c0_0 = arith.constant 0 : index
    %c0_1 = arith.constant 0 : index
    %0 = vector.load %arg1[%c0, %c0_0, %c0_1] : memref<1x8x256xf32, #tpu.memory_space<vmem>>, vector<1x8x256xf32>
    %1 = vector.shape_cast %0 : vector<1x8x256xf32> to vector<8x256xf32>
    %c0_2 = arith.constant 0 : index
    %c0_3 = arith.constant 0 : index
    %2 = vector.load %arg12[%c0_2, %c0_3] : memref<9x256xf32, #tpu.memory_space<vmem>>, vector<1x256xf32>
    %3 = vector.broadcast %2 : vector<1x256xf32> to vector<8x256xf32>
    %4 = arith.mulf %1, %3 : vector<8x256xf32>
    %c1_i32 = arith.constant 1 : i32
    %5 = tpu.dynamic_rotate %1 by %c1_i32 dim 1 : vector<8x256xf32>, i32 -> vector<8x256xf32>
    %c1 = arith.constant 1 : index
    %c0_4 = arith.constant 0 : index
    %6 = vector.load %arg12[%c1, %c0_4] : memref<9x256xf32, #tpu.memory_space<vmem>>, vector<1x256xf32>
    %7 = vector.broadcast %6 : vector<1x256xf32> to vector<8x256xf32>
    %8 = arith.mulf %5, %7 : vector<8x256xf32>
    %c2_i32 = arith.constant 2 : i32
    %9 = tpu.dynamic_rotate %1 by %c2_i32 dim 1 : vector<8x256xf32>, i32 -> vector<8x256xf32>
    %c2 = arith.constant 2 : index
    %c0_5 = arith.constant 0 : index
    %10 = vector.load %arg12[%c2, %c0_5] : memref<9x256xf32, #tpu.memory_space<vmem>>, vector<1x256xf32>
    %11 = vector.broadcast %10 : vector<1x256xf32> to vector<8x256xf32>
    %12 = arith.mulf %9, %11 : vector<8x256xf32>
    %c16_i32 = arith.constant 16 : i32
    %13 = tpu.dynamic_rotate %1 by %c16_i32 dim 1 : vector<8x256xf32>, i32 -> vector<8x256xf32>
    %c3 = arith.constant 3 : index
    %c0_6 = arith.constant 0 : index
    %14 = vector.load %arg12[%c3, %c0_6] : memref<9x256xf32, #tpu.memory_space<vmem>>, vector<1x256xf32>
    %15 = vector.broadcast %14 : vector<1x256xf32> to vector<8x256xf32>
    %16 = arith.mulf %13, %15 : vector<8x256xf32>
    %c17_i32 = arith.constant 17 : i32
    %17 = tpu.dynamic_rotate %1 by %c17_i32 dim 1 : vector<8x256xf32>, i32 -> vector<8x256xf32>
    %c4 = arith.constant 4 : index
    %c0_7 = arith.constant 0 : index
    %18 = vector.load %arg12[%c4, %c0_7] : memref<9x256xf32, #tpu.memory_space<vmem>>, vector<1x256xf32>
    %19 = vector.broadcast %18 : vector<1x256xf32> to vector<8x256xf32>
    %20 = arith.mulf %17, %19 : vector<8x256xf32>
    %c18_i32 = arith.constant 18 : i32
    %21 = tpu.dynamic_rotate %1 by %c18_i32 dim 1 : vector<8x256xf32>, i32 -> vector<8x256xf32>
    %c5 = arith.constant 5 : index
    %c0_8 = arith.constant 0 : index
    %22 = vector.load %arg12[%c5, %c0_8] : memref<9x256xf32, #tpu.memory_space<vmem>>, vector<1x256xf32>
    %23 = vector.broadcast %22 : vector<1x256xf32> to vector<8x256xf32>
    %24 = arith.mulf %21, %23 : vector<8x256xf32>
    %c32_i32 = arith.constant 32 : i32
    %25 = tpu.dynamic_rotate %1 by %c32_i32 dim 1 : vector<8x256xf32>, i32 -> vector<8x256xf32>
    %c6 = arith.constant 6 : index
    %c0_9 = arith.constant 0 : index
    %26 = vector.load %arg12[%c6, %c0_9] : memref<9x256xf32, #tpu.memory_space<vmem>>, vector<1x256xf32>
    %27 = vector.broadcast %26 : vector<1x256xf32> to vector<8x256xf32>
    %28 = arith.mulf %25, %27 : vector<8x256xf32>
    %c33_i32 = arith.constant 33 : i32
    %29 = tpu.dynamic_rotate %1 by %c33_i32 dim 1 : vector<8x256xf32>, i32 -> vector<8x256xf32>
    %c7 = arith.constant 7 : index
    %c0_10 = arith.constant 0 : index
    %30 = vector.load %arg12[%c7, %c0_10] : memref<9x256xf32, #tpu.memory_space<vmem>>, vector<1x256xf32>
    %31 = vector.broadcast %30 : vector<1x256xf32> to vector<8x256xf32>
    %32 = arith.mulf %29, %31 : vector<8x256xf32>
    %c34_i32 = arith.constant 34 : i32
    %33 = tpu.dynamic_rotate %1 by %c34_i32 dim 1 : vector<8x256xf32>, i32 -> vector<8x256xf32>
    %c8 = arith.constant 8 : index
    %c0_11 = arith.constant 0 : index
    %34 = vector.load %arg12[%c8, %c0_11] : memref<9x256xf32, #tpu.memory_space<vmem>>, vector<1x256xf32>
    %35 = vector.broadcast %34 : vector<1x256xf32> to vector<8x256xf32>
    %36 = arith.mulf %33, %35 : vector<8x256xf32>
    %37 = tpu.concatenate %4, %8, %12, %16, %20, %24, %28, %32, %36 in 0 : vector<8x256xf32>, vector<8x256xf32>, vector<8x256xf32>, vector<8x256xf32>, vector<8x256xf32>, vector<8x256xf32>, vector<8x256xf32>, vector<8x256xf32>, vector<8x256xf32> -> vector<72x256xf32>
    %38 = arith.truncf %37 : vector<72x256xf32> to vector<72x256xbf16>
    %c0_12 = arith.constant 0 : index
    %c0_13 = arith.constant 0 : index
    %39 = vector.load %arg3[%c0_12, %c0_13] : memref<8x72xbf16, #tpu.memory_space<vmem>>, vector<8x72xbf16>
    %cst = arith.constant dense<0.000000e+00> : vector<8x256xf32>
    %40 = tpu.matmul %39, %38, %cst {dimension_numbers = #tpu.dot_dimension_numbers<[1], [0], [0], [1], [0, 0, 1, 1], [], []>} : vector<8x72xbf16>, vector<72x256xbf16>, vector<8x256xf32> -> vector<8x256xf32>
    %c0_14 = arith.constant 0 : index
    %c0_15 = arith.constant 0 : index
    %41 = vector.load %arg6[%c0_14, %c0_15] : memref<8x1xf32, #tpu.memory_space<vmem>>, vector<8x1xf32>
    %42 = vector.broadcast %41 : vector<8x1xf32> to vector<8x256xf32>
    %43 = arith.addf %40, %42 : vector<8x256xf32>
    %cst_16 = arith.constant 0.000000e+00 : f32
    %44 = vector.broadcast %cst_16 : f32 to vector<8x256xf32>
    %45 = arith.maximumf %43, %44 : vector<8x256xf32>
    %c0_17 = arith.constant 0 : index
    %c0_18 = arith.constant 0 : index
    %c0_19 = arith.constant 0 : index
    %46 = vector.load %arg9[%c0_17, %c0_18, %c0_19] : memref<1x8x1xf32, #tpu.memory_space<vmem>>, vector<1x8x1xf32>
    %47 = vector.shape_cast %46 : vector<1x8x1xf32> to vector<8x1xf32>
    %48 = vector.broadcast %47 : vector<8x1xf32> to vector<8x256xf32>
    %49 = arith.addf %45, %48 : vector<8x256xf32>
    %c0_20 = arith.constant 0 : index
    %c0_21 = arith.constant 0 : index
    %c0_22 = arith.constant 0 : index
    %50 = vector.load %arg2[%c0_20, %c0_21, %c0_22] : memref<1x8x256xf32, #tpu.memory_space<vmem>>, vector<1x8x256xf32>
    %51 = vector.shape_cast %50 : vector<1x8x256xf32> to vector<8x256xf32>
    %52 = tpu.concatenate %49, %51 in 0 : vector<8x256xf32>, vector<8x256xf32> -> vector<16x256xf32>
    %c17_i32_23 = arith.constant 17 : i32
    %53 = tpu.dynamic_rotate %52 by %c17_i32_23 dim 1 : vector<16x256xf32>, i32 -> vector<16x256xf32>
    %c0_24 = arith.constant 0 : index
    %c0_25 = arith.constant 0 : index
    %54 = vector.load %arg13[%c0_24, %c0_25] : memref<9x256xf32, #tpu.memory_space<vmem>>, vector<1x256xf32>
    %55 = vector.broadcast %54 : vector<1x256xf32> to vector<16x256xf32>
    %56 = arith.mulf %53, %55 : vector<16x256xf32>
    %c16_i32_26 = arith.constant 16 : i32
    %57 = tpu.dynamic_rotate %52 by %c16_i32_26 dim 1 : vector<16x256xf32>, i32 -> vector<16x256xf32>
    %c1_27 = arith.constant 1 : index
    %c0_28 = arith.constant 0 : index
    %58 = vector.load %arg13[%c1_27, %c0_28] : memref<9x256xf32, #tpu.memory_space<vmem>>, vector<1x256xf32>
    %59 = vector.broadcast %58 : vector<1x256xf32> to vector<16x256xf32>
    %60 = arith.mulf %57, %59 : vector<16x256xf32>
    %c15_i32 = arith.constant 15 : i32
    %61 = tpu.dynamic_rotate %52 by %c15_i32 dim 1 : vector<16x256xf32>, i32 -> vector<16x256xf32>
    %c2_29 = arith.constant 2 : index
    %c0_30 = arith.constant 0 : index
    %62 = vector.load %arg13[%c2_29, %c0_30] : memref<9x256xf32, #tpu.memory_space<vmem>>, vector<1x256xf32>
    %63 = vector.broadcast %62 : vector<1x256xf32> to vector<16x256xf32>
    %64 = arith.mulf %61, %63 : vector<16x256xf32>
    %c1_i32_31 = arith.constant 1 : i32
    %65 = tpu.dynamic_rotate %52 by %c1_i32_31 dim 1 : vector<16x256xf32>, i32 -> vector<16x256xf32>
    %c3_32 = arith.constant 3 : index
    %c0_33 = arith.constant 0 : index
    %66 = vector.load %arg13[%c3_32, %c0_33] : memref<9x256xf32, #tpu.memory_space<vmem>>, vector<1x256xf32>
    %67 = vector.broadcast %66 : vector<1x256xf32> to vector<16x256xf32>
    %68 = arith.mulf %65, %67 : vector<16x256xf32>
    %c4_34 = arith.constant 4 : index
    %c0_35 = arith.constant 0 : index
    %69 = vector.load %arg13[%c4_34, %c0_35] : memref<9x256xf32, #tpu.memory_space<vmem>>, vector<1x256xf32>
    %70 = vector.broadcast %69 : vector<1x256xf32> to vector<16x256xf32>
    %71 = arith.mulf %52, %70 : vector<16x256xf32>
    %c255_i32 = arith.constant 255 : i32
    %72 = tpu.dynamic_rotate %52 by %c255_i32 dim 1 : vector<16x256xf32>, i32 -> vector<16x256xf32>
    %c5_36 = arith.constant 5 : index
    %c0_37 = arith.constant 0 : index
    %73 = vector.load %arg13[%c5_36, %c0_37] : memref<9x256xf32, #tpu.memory_space<vmem>>, vector<1x256xf32>
    %74 = vector.broadcast %73 : vector<1x256xf32> to vector<16x256xf32>
    %75 = arith.mulf %72, %74 : vector<16x256xf32>
    %c241_i32 = arith.constant 241 : i32
    %76 = tpu.dynamic_rotate %52 by %c241_i32 dim 1 : vector<16x256xf32>, i32 -> vector<16x256xf32>
    %c6_38 = arith.constant 6 : index
    %c0_39 = arith.constant 0 : index
    %77 = vector.load %arg13[%c6_38, %c0_39] : memref<9x256xf32, #tpu.memory_space<vmem>>, vector<1x256xf32>
    %78 = vector.broadcast %77 : vector<1x256xf32> to vector<16x256xf32>
    %79 = arith.mulf %76, %78 : vector<16x256xf32>
    %c240_i32 = arith.constant 240 : i32
    %80 = tpu.dynamic_rotate %52 by %c240_i32 dim 1 : vector<16x256xf32>, i32 -> vector<16x256xf32>
    %c7_40 = arith.constant 7 : index
    %c0_41 = arith.constant 0 : index
    %81 = vector.load %arg13[%c7_40, %c0_41] : memref<9x256xf32, #tpu.memory_space<vmem>>, vector<1x256xf32>
    %82 = vector.broadcast %81 : vector<1x256xf32> to vector<16x256xf32>
    %83 = arith.mulf %80, %82 : vector<16x256xf32>
    %c239_i32 = arith.constant 239 : i32
    %84 = tpu.dynamic_rotate %52 by %c239_i32 dim 1 : vector<16x256xf32>, i32 -> vector<16x256xf32>
    %c8_42 = arith.constant 8 : index
    %c0_43 = arith.constant 0 : index
    %85 = vector.load %arg13[%c8_42, %c0_43] : memref<9x256xf32, #tpu.memory_space<vmem>>, vector<1x256xf32>
    %86 = vector.broadcast %85 : vector<1x256xf32> to vector<16x256xf32>
    %87 = arith.mulf %84, %86 : vector<16x256xf32>
    %88 = tpu.concatenate %56, %60, %64, %68, %71, %75, %79, %83, %87 in 0 : vector<16x256xf32>, vector<16x256xf32>, vector<16x256xf32>, vector<16x256xf32>, vector<16x256xf32>, vector<16x256xf32>, vector<16x256xf32>, vector<16x256xf32>, vector<16x256xf32> -> vector<144x256xf32>
    %89 = arith.truncf %88 : vector<144x256xf32> to vector<144x256xbf16>
    %c0_44 = arith.constant 0 : index
    %c0_45 = arith.constant 0 : index
    %90 = vector.load %arg4[%c0_44, %c0_45] : memref<8x144xbf16, #tpu.memory_space<vmem>>, vector<8x144xbf16>
    %cst_46 = arith.constant dense<0.000000e+00> : vector<8x256xf32>
    %91 = tpu.matmul %90, %89, %cst_46 {dimension_numbers = #tpu.dot_dimension_numbers<[1], [0], [0], [1], [0, 0, 1, 1], [], []>} : vector<8x144xbf16>, vector<144x256xbf16>, vector<8x256xf32> -> vector<8x256xf32>
    %c0_47 = arith.constant 0 : index
    %c0_48 = arith.constant 0 : index
    %92 = vector.load %arg7[%c0_47, %c0_48] : memref<8x1xf32, #tpu.memory_space<vmem>>, vector<8x1xf32>
    %93 = vector.broadcast %92 : vector<8x1xf32> to vector<8x256xf32>
    %94 = arith.addf %91, %93 : vector<8x256xf32>
    %cst_49 = arith.constant 0.000000e+00 : f32
    %95 = vector.broadcast %cst_49 : f32 to vector<8x256xf32>
    %96 = arith.maximumf %94, %95 : vector<8x256xf32>
    %c0_50 = arith.constant 0 : index
    %c0_51 = arith.constant 0 : index
    %c0_52 = arith.constant 0 : index
    %97 = vector.load %arg10[%c0_50, %c0_51, %c0_52] : memref<1x8x1xf32, #tpu.memory_space<vmem>>, vector<1x8x1xf32>
    %98 = vector.shape_cast %97 : vector<1x8x1xf32> to vector<8x1xf32>
    %99 = vector.broadcast %98 : vector<8x1xf32> to vector<8x256xf32>
    %100 = arith.addf %96, %99 : vector<8x256xf32>
    %c17_i32_53 = arith.constant 17 : i32
    %101 = tpu.dynamic_rotate %100 by %c17_i32_53 dim 1 : vector<8x256xf32>, i32 -> vector<8x256xf32>
    %c0_54 = arith.constant 0 : index
    %c0_55 = arith.constant 0 : index
    %102 = vector.load %arg13[%c0_54, %c0_55] : memref<9x256xf32, #tpu.memory_space<vmem>>, vector<1x256xf32>
    %103 = vector.broadcast %102 : vector<1x256xf32> to vector<8x256xf32>
    %104 = arith.mulf %101, %103 : vector<8x256xf32>
    %c16_i32_56 = arith.constant 16 : i32
    %105 = tpu.dynamic_rotate %100 by %c16_i32_56 dim 1 : vector<8x256xf32>, i32 -> vector<8x256xf32>
    %c1_57 = arith.constant 1 : index
    %c0_58 = arith.constant 0 : index
    %106 = vector.load %arg13[%c1_57, %c0_58] : memref<9x256xf32, #tpu.memory_space<vmem>>, vector<1x256xf32>
    %107 = vector.broadcast %106 : vector<1x256xf32> to vector<8x256xf32>
    %108 = arith.mulf %105, %107 : vector<8x256xf32>
    %c15_i32_59 = arith.constant 15 : i32
    %109 = tpu.dynamic_rotate %100 by %c15_i32_59 dim 1 : vector<8x256xf32>, i32 -> vector<8x256xf32>
    %c2_60 = arith.constant 2 : index
    %c0_61 = arith.constant 0 : index
    %110 = vector.load %arg13[%c2_60, %c0_61] : memref<9x256xf32, #tpu.memory_space<vmem>>, vector<1x256xf32>
    %111 = vector.broadcast %110 : vector<1x256xf32> to vector<8x256xf32>
    %112 = arith.mulf %109, %111 : vector<8x256xf32>
    %c1_i32_62 = arith.constant 1 : i32
    %113 = tpu.dynamic_rotate %100 by %c1_i32_62 dim 1 : vector<8x256xf32>, i32 -> vector<8x256xf32>
    %c3_63 = arith.constant 3 : index
    %c0_64 = arith.constant 0 : index
    %114 = vector.load %arg13[%c3_63, %c0_64] : memref<9x256xf32, #tpu.memory_space<vmem>>, vector<1x256xf32>
    %115 = vector.broadcast %114 : vector<1x256xf32> to vector<8x256xf32>
    %116 = arith.mulf %113, %115 : vector<8x256xf32>
    %c4_65 = arith.constant 4 : index
    %c0_66 = arith.constant 0 : index
    %117 = vector.load %arg13[%c4_65, %c0_66] : memref<9x256xf32, #tpu.memory_space<vmem>>, vector<1x256xf32>
    %118 = vector.broadcast %117 : vector<1x256xf32> to vector<8x256xf32>
    %119 = arith.mulf %100, %118 : vector<8x256xf32>
    %c255_i32_67 = arith.constant 255 : i32
    %120 = tpu.dynamic_rotate %100 by %c255_i32_67 dim 1 : vector<8x256xf32>, i32 -> vector<8x256xf32>
    %c5_68 = arith.constant 5 : index
    %c0_69 = arith.constant 0 : index
    %121 = vector.load %arg13[%c5_68, %c0_69] : memref<9x256xf32, #tpu.memory_space<vmem>>, vector<1x256xf32>
    %122 = vector.broadcast %121 : vector<1x256xf32> to vector<8x256xf32>
    %123 = arith.mulf %120, %122 : vector<8x256xf32>
    %c241_i32_70 = arith.constant 241 : i32
    %124 = tpu.dynamic_rotate %100 by %c241_i32_70 dim 1 : vector<8x256xf32>, i32 -> vector<8x256xf32>
    %c6_71 = arith.constant 6 : index
    %c0_72 = arith.constant 0 : index
    %125 = vector.load %arg13[%c6_71, %c0_72] : memref<9x256xf32, #tpu.memory_space<vmem>>, vector<1x256xf32>
    %126 = vector.broadcast %125 : vector<1x256xf32> to vector<8x256xf32>
    %127 = arith.mulf %124, %126 : vector<8x256xf32>
    %c240_i32_73 = arith.constant 240 : i32
    %128 = tpu.dynamic_rotate %100 by %c240_i32_73 dim 1 : vector<8x256xf32>, i32 -> vector<8x256xf32>
    %c7_74 = arith.constant 7 : index
    %c0_75 = arith.constant 0 : index
    %129 = vector.load %arg13[%c7_74, %c0_75] : memref<9x256xf32, #tpu.memory_space<vmem>>, vector<1x256xf32>
    %130 = vector.broadcast %129 : vector<1x256xf32> to vector<8x256xf32>
    %131 = arith.mulf %128, %130 : vector<8x256xf32>
    %c239_i32_76 = arith.constant 239 : i32
    %132 = tpu.dynamic_rotate %100 by %c239_i32_76 dim 1 : vector<8x256xf32>, i32 -> vector<8x256xf32>
    %c8_77 = arith.constant 8 : index
    %c0_78 = arith.constant 0 : index
    %133 = vector.load %arg13[%c8_77, %c0_78] : memref<9x256xf32, #tpu.memory_space<vmem>>, vector<1x256xf32>
    %134 = vector.broadcast %133 : vector<1x256xf32> to vector<8x256xf32>
    %135 = arith.mulf %132, %134 : vector<8x256xf32>
    %136 = tpu.concatenate %104, %108, %112, %116, %119, %123, %127, %131, %135 in 0 : vector<8x256xf32>, vector<8x256xf32>, vector<8x256xf32>, vector<8x256xf32>, vector<8x256xf32>, vector<8x256xf32>, vector<8x256xf32>, vector<8x256xf32>, vector<8x256xf32> -> vector<72x256xf32>
    %137 = arith.truncf %136 : vector<72x256xf32> to vector<72x256xbf16>
    %c0_79 = arith.constant 0 : index
    %c0_80 = arith.constant 0 : index
    %138 = vector.load %arg5[%c0_79, %c0_80] : memref<8x72xbf16, #tpu.memory_space<vmem>>, vector<8x72xbf16>
    %cst_81 = arith.constant dense<0.000000e+00> : vector<8x256xf32>
    %139 = tpu.matmul %138, %137, %cst_81 {dimension_numbers = #tpu.dot_dimension_numbers<[1], [0], [0], [1], [0, 0, 1, 1], [], []>} : vector<8x72xbf16>, vector<72x256xbf16>, vector<8x256xf32> -> vector<8x256xf32>
    %c0_82 = arith.constant 0 : index
    %c0_83 = arith.constant 0 : index
    %140 = vector.load %arg8[%c0_82, %c0_83] : memref<8x1xf32, #tpu.memory_space<vmem>>, vector<8x1xf32>
    %141 = vector.broadcast %140 : vector<8x1xf32> to vector<8x256xf32>
    %142 = arith.addf %139, %141 : vector<8x256xf32>
    %cst_84 = arith.constant 0.000000e+00 : f32
    %143 = vector.broadcast %cst_84 : f32 to vector<8x256xf32>
    %144 = arith.maximumf %142, %143 : vector<8x256xf32>
    %c0_85 = arith.constant 0 : index
    %c0_86 = arith.constant 0 : index
    %c0_87 = arith.constant 0 : index
    %145 = vector.load %arg11[%c0_85, %c0_86, %c0_87] : memref<1x8x1xf32, #tpu.memory_space<vmem>>, vector<1x8x1xf32>
    %146 = vector.shape_cast %145 : vector<1x8x1xf32> to vector<8x1xf32>
    %147 = vector.broadcast %146 : vector<8x1xf32> to vector<8x256xf32>
    %148 = arith.addf %144, %147 : vector<8x256xf32>
    %c0_88 = arith.constant 0 : index
    %c0_89 = arith.constant 0 : index
    %c0_90 = arith.constant 0 : index
    %149 = vector.load %arg14[%c0_88, %c0_89, %c0_90] : memref<1x8x256xf32, #tpu.memory_space<vmem>>, vector<1x8x256xf32>
    %150 = vector.shape_cast %149 : vector<1x8x256xf32> to vector<8x256xf32>
    %151 = vector.shape_cast %148 : vector<8x256xf32> to vector<1x8x256xf32>
    tpu.vector_store %arg14[%c0_88, %c0_89, %c0_90], %151 {strides = array<i32>} : memref<1x8x256xf32, #tpu.memory_space<vmem>>, vector<1x8x256xf32>,
    return
  }
  func.func @transform_0(%arg0: i32) -> (i32, i32, i32) {
    %c0_i32 = arith.constant 0 : i32
    %c0_i32_0 = arith.constant 0 : i32
    %c0_i32_1 = arith.constant 0 : i32
    return %arg0, %c0_i32, %c0_i32_0 : i32, i32, i32
  }
  func.func @transform_1(%arg0: i32) -> (i32, i32, i32) {
    %c0_i32 = arith.constant 0 : i32
    %c0_i32_0 = arith.constant 0 : i32
    %c0_i32_1 = arith.constant 0 : i32
    return %arg0, %c0_i32, %c0_i32_0 : i32, i32, i32
  }
  func.func @transform_2(%arg0: i32) -> (i32, i32) {
    %c0_i32 = arith.constant 0 : i32
    %c0_i32_0 = arith.constant 0 : i32
    %c0_i32_1 = arith.constant 0 : i32
    return %c0_i32, %c0_i32_0 : i32, i32
  }
  func.func @transform_3(%arg0: i32) -> (i32, i32) {
    %c0_i32 = arith.constant 0 : i32
    %c0_i32_0 = arith.constant 0 : i32
    %c0_i32_1 = arith.constant 0 : i32
    return %c0_i32, %c0_i32_0 : i32, i32
  }
  func.func @transform_4(%arg0: i32) -> (i32, i32) {
    %c0_i32 = arith.constant 0 : i32
    %c0_i32_0 = arith.constant 0 : i32
    %c0_i32_1 = arith.constant 0 : i32
    return %c0_i32, %c0_i32_0 : i32, i32
  }
  func.func @transform_5(%arg0: i32) -> (i32, i32) {
    %c0_i32 = arith.constant 0 : i32
    %c0_i32_0 = arith.constant 0 : i32
    %c0_i32_1 = arith.constant 0 : i32
    return %c0_i32, %c0_i32_0 : i32, i32
  }
  func.func @transform_6(%arg0: i32) -> (i32, i32) {
    %c0_i32 = arith.constant 0 : i32
    %c0_i32_0 = arith.constant 0 : i32
    %c0_i32_1 = arith.constant 0 : i32
    return %c0_i32, %c0_i32_0 : i32, i32
  }
  func.func @transform_7(%arg0: i32) -> (i32, i32) {
    %c0_i32 = arith.constant 0 : i32
    %c0_i32_0 = arith.constant 0 : i32
    %c0_i32_1 = arith.constant 0 : i32
    return %c0_i32, %c0_i32_0 : i32, i32
  }
  func.func @transform_8(%arg0: i32) -> (i32, i32, i32) {
    %c0_i32 = arith.constant 0 : i32
    %c0_i32_0 = arith.constant 0 : i32
    %c0_i32_1 = arith.constant 0 : i32
    return %arg0, %c0_i32, %c0_i32_0 : i32, i32, i32
  }
  func.func @transform_9(%arg0: i32) -> (i32, i32, i32) {
    %c0_i32 = arith.constant 0 : i32
    %c0_i32_0 = arith.constant 0 : i32
    %c0_i32_1 = arith.constant 0 : i32
    return %arg0, %c0_i32, %c0_i32_0 : i32, i32, i32
  }
  func.func @transform_10(%arg0: i32) -> (i32, i32, i32) {
    %c0_i32 = arith.constant 0 : i32
    %c0_i32_0 = arith.constant 0 : i32
    %c0_i32_1 = arith.constant 0 : i32
    return %arg0, %c0_i32, %c0_i32_0 : i32, i32, i32
  }
  func.func @transform_11(%arg0: i32) -> (i32, i32) {
    %c0_i32 = arith.constant 0 : i32
    %c0_i32_0 = arith.constant 0 : i32
    %c0_i32_1 = arith.constant 0 : i32
    return %c0_i32, %c0_i32_0 : i32, i32
  }
  func.func @transform_12(%arg0: i32) -> (i32, i32) {
    %c0_i32 = arith.constant 0 : i32
    %c0_i32_0 = arith.constant 0 : i32
    %c0_i32_1 = arith.constant 0 : i32
    return %c0_i32, %c0_i32_0 : i32, i32
  }
  func.func @transform_13(%arg0: i32) -> (i32, i32, i32) {
    %c0_i32 = arith.constant 0 : i32
    %c0_i32_0 = arith.constant 0 : i32
    %c0_i32_1 = arith.constant 0 : i32
    return %arg0, %c0_i32, %c0_i32_0 : i32, i32, i32
  }
}

</mosaic_0001>

<bundles_post_ra>
// kernel: tpu_custom_call.1
= control target key start
LH: loop header
LB: loop body
LE: loop exit
PB: predicated region body
PF: predicated region fallthrough
CT: control target
= control target key end

     0   :  { %s2555_s0 = inlined_call_operand.vmem [shape: f32[2,8,256], index: 0, kind: input, shape index: {}]   ;;  %s2556_s1 = inlined_call_operand.vmem [shape: f32[2,8,256], index: 1, kind: input, shape index: {}]   ;;  %s2557_s2 = inlined_call_operand.hbm [shape: bf16[8,72], index: 2, kind: input, shape index: {}]   ;;  %s2558_s3 = inlined_call_operand.hbm [shape: bf16[8,144], index: 3, kind: input, shape index: {}]   ;;  %s2559_s4 = inlined_call_operand.hbm [shape: bf16[8,72], index: 4, kind: input, shape index: {}]   ;;  %s2560_s5 = inlined_call_operand.vmem [shape: f32[8,1], index: 5, kind: input, shape index: {}]   ;;  %s2561_s6 = inlined_call_operand.vmem [shape: f32[8,1], index: 6, kind: input, shape index: {}]   ;;  %s2562_s7 = inlined_call_operand.vmem [shape: f32[8,1], index: 7, kind: input, shape index: {}]   ;;  %s2563_s8 = inlined_call_operand.vmem [shape: f32[2,8,1], index: 8, kind: input, shape index: {}]   ;;  %s2564_s9 = inlined_call_operand.vmem [shape: f32[2,8,1], index: 9, kind: input, shape index: {}]   ;;  %s2565_s10 = inlined_call_operand.vmem [shape: f32[2,8,1], index: 10, kind: input, shape index: {}]   ;;  %s2566_s11 = inlined_call_operand.vmem [shape: f32[9,256], index: 11, kind: input, shape index: {}]   ;;  %s2567_s12 = inlined_call_operand.hbm [shape: f32[9,256], index: 12, kind: input, shape index: {}]   ;;  %s2568_s13 = inlined_call_operand.hbm [shape: f32[2,8,256], index: 13, kind: output, shape index: {}]  }
   0x1   :  { %2581 = sst [smem:[#allocation17_spill]] %s2555_s0 }
   0x2   :  { %2582 = sst [smem:[#allocation18_spill]] %s2557_s2 }
   0x3   :  { %2583 = sst [smem:[#allocation19_spill]] %s2558_s3 }
   0x4   :  { %18 = vsyncpa [#allocation3], 0 }
   0x5   :  { %19 = vsyncpa [#allocation6], 0 }
   0x6   :  { %20 = vsyncpa [#allocation9], 0 }
   0x7   :  { %21 = vsyncpa [#allocation4], 0 }
   0x8   :  { %23 = vsyncpa [#allocation4 + $0x1], 0  ;;  %s1898_s25 = smov 0   ;;  %s1900_s26 = smov 0  }
   0x9   :  { %s1902_s27 = smov 0   ;;  %s1904_s28 = smov 0  }
   0xa LB: > { %2584 = sst [smem:[#allocation15_spill]] %s1801_s27  ;;  %s1919_s29 = sadd.s32 4294967295, %s1805_s28   ;;  %s1805_s28 = sphi %s1904_s28, %s2610_s28   ;;  %s1801_s27 = sphi %s1902_s27, %s2607_s27   ;;  %s1797_s26 = sphi %s1900_s26, %s2609_s26   ;;  %s1793_s25 = sphi %s1898_s25, %s2608_s25  }
   0xb   : > { %s1486_s30 = sadd.s32 4294967294, %s1805_s28   ;;  %s1923_s14 = sadd.s32 1, %s1805_s28  }
   0xc   : > { %s334_s15 = sadd.s32 1, %s1801_s27  ;;  %s331_s16 = ssub.s32 %s1805_s28, %s1923_s14 }
   0xd   : > { %p344_p0 = scmp.ne.s32.totalorder %s1801_s27, %s1797_s26  ;;  %p332_p1 = scmp.eq.s32.totalorder %s331_s16, 0 }
   0xe   : > { %p345_p2 = scmp.eq.s32.totalorder %s1919_s29, 1  ;;  %p350_p3 = scmp.ne.s32.totalorder %s1797_s26, %s1793_s25 }
   0xf   : > { %p351_p4 = scmp.eq.s32.totalorder %s1486_s30, 1  ;;  %p1487_p7 = scmp.ge.s32.totalorder %s1805_s28, 1 }
  0x10   : > { %s1934_s17 = scalar_select %p332_p1, %s1801_s27, %s334_s15  }
  0x11   : > { %p1936_p5 = por %p345_p2, %p344_p0  ;;  %p1940_p6 = por %p351_p4, %p350_p3 }
  0x12   : > { %2585 = sst [smem:[#allocation16_spill]] %s1934_s17  ;;  %p358_p8 = scmp.lt.s32.totalorder %s1805_s28, 3 }
  0x13   : > { %s2586_s18 = scalar_select %p1936_p5, 1, 0 }
  0x14   : > { %s2587_s19 = scalar_select %p1940_p6, 1, 0 }
  0x15   : > { %p2569_p9 = scmp.eq.s32.totalorder %s1919_s29, 0  ;;  %p1947_p10 = pnand %p1487_p7, %p358_p8 }
  0x16   : > { %s1807_s21 = smov [#allocation5]   ;;  %s1808_s23 = smov [#allocation2]  }
  0x17   : > { %s2588_s20 = scalar_select %p1947_p10, 1, 0 }
  0x18   : > { %s382_s22 = sshll.u32 %s1807_s21, 4  ;;  %p1547_p11 = pneg %p1947_p10  ;;  %s383_s22 = int_to_ptr.vmem [resolvable:$true] %s382_s22 }
  0x19   : > { %s371_s24 = sshll.u32 %s1808_s23, 4  ;;  %s1809_s15 = smov [#allocation7]   ;;  %s372_s24 = int_to_ptr.vmem [resolvable:$true] %s371_s24 }
  0x1a   : > { %p1955_p12 = pnand %p2569_p9, %p1547_p11  ;;  %s393_s16 = sshll.u32 %s1809_s15, 4  ;;  %s1959_s16 = int_to_ptr.vmem [resolvable:$true] %s393_s16 }
  0x1b   : > { %s1640_s21 = scalar_lea.vmem %s383_s22, 128  ;;  %p1648_p3 = scmp.lt.s32.totalorder %s383_s22, %s383_s22 }
  0x1c   : > { %p1631_p13 = pneg %p1955_p12  ;;  %p1641_p0 = scmp.ne.s32.totalorder %s383_s22, %s1640_s21 }
  0x1d   : > { %p1649_p4 = scmp.lt.s32.totalorder %s1640_s21, %s1640_s21 }
  0x1e   : > { %p1643_p1 = pnand %p1641_p0, %p1631_p13 }
  0x1f   : > { %p1650_p7 = por %p1649_p4, %p1648_p3 }
  0x20   : > { %p1644_p2 = pneg %p1643_p1 }
  0x22   : > { %p1651_p8 = pnand %p1650_p7, %p1644_p2 }
  0x24   : > { %1654 = shalt.err (!%p1651_p8)
}
  0x25   : > { %s2590_s3 = sld [smem:[#allocation19_spill]]  ;;  %s1666_s15 = scalar_lea.vmem %s372_s24, 64 }
  0x26   : > { %p1667_p11 = scmp.ne.s32.totalorder %s372_s24, %s1666_s15  ;;  %p1674_p0 = scmp.lt.s32.totalorder %s372_s24, %s372_s24 }
  0x27   : > { %p1675_p1 = scmp.lt.s32.totalorder %s1666_s15, %s1666_s15 }
  0x28   : > { %p1669_p9 = pnand %p1667_p11, %p1631_p13 }
  0x29   : > { %p1676_p5 = por %p1675_p1, %p1674_p0 }
  0x2a   : > { %p1670_p6 = pneg %p1669_p9 }
  0x2b   : > { %1553 = dma.hbm_to_vmem [thread:$0]  (!%p1955_p12), %s2590_s3, 128, %s383_s22, [#allocation6]  }
  0x2c   : > { %p1677_p10 = pnand %p1676_p5, %p1670_p6 }
  0x2e   : > { %1680 = shalt.err (!%p1677_p10)
}
  0x2f   : > { %s2591_s2 = sld [smem:[#allocation18_spill]]  ;;  %s1692_s17 = scalar_lea.vmem %s1959_s16, 64 }
  0x30   : > { %p1693_p2 = scmp.ne.s32.totalorder %s1959_s16, %s1692_s17  ;;  %p1700_p4 = scmp.lt.s32.totalorder %s1959_s16, %s1959_s16 }
  0x31   : > { %p1701_p5 = scmp.lt.s32.totalorder %s1692_s17, %s1692_s17 }
  0x32   : > { %p1695_p9 = pnand %p1693_p2, %p1631_p13 }
  0x33   : > { %p1702_p6 = por %p1701_p5, %p1700_p4 }
  0x34   : > { %p1696_p3 = pneg %p1695_p9 }
  0x35   : > { %1550 = dma.hbm_to_vmem [thread:$0]  (!%p1955_p12), %s2591_s2, 64, %s372_s24, [#allocation3]  }
  0x36   : > { %p1703_p10 = pnand %p1702_p6, %p1696_p3 }
  0x38   : > { %1706 = shalt.err (!%p1703_p10)
}
  0x39   : > { %1556 = dma.hbm_to_vmem [thread:$0]  (!%p1955_p12), %s2559_s4, 64, %s1959_s16, [#allocation6]  }
  0x3a   : > { %s1810_s24 = smov [#allocation8]  }
  0x3b   : > { %s415_s23 = sshll.u32 %s1810_s24, 4  ;;  %s416_s23 = int_to_ptr.vmem [resolvable:$true] %s415_s23 }
  0x3c   : > { %s1718_s15 = scalar_lea.vmem %s416_s23, 512  ;;  %p1726_p0 = scmp.lt.s32.totalorder %s416_s23, %s416_s23 }
  0x3d   : > { %p1719_p7 = scmp.ne.s32.totalorder %s416_s23, %s1718_s15  ;;  %p1727_p1 = scmp.lt.s32.totalorder %s1718_s15, %s1718_s15 }
  0x3f   : > { %p1721_p8 = pnand %p1719_p7, %p1631_p13  ;;  %p1728_p2 = por %p1727_p1, %p1726_p0 }
  0x41   : > { %p1722_p11 = pneg %p1721_p8 }
  0x43   : > { %p1729_p9 = pnand %p1728_p2, %p1722_p11 }
  0x45   : > { %1732 = shalt.err (!%p1729_p9)
}
  0x46   : > { %s1811_s21 = smov 256   ;;  %s1812_s17 = smov 16  }
  0x47   : > { %1559 = dma.hbm_to_vmem [thread:$0]  (!%p1955_p12), %s2567_s12, 512, %s416_s23, [#allocation9], %s1811_s21, %s1811_s21, %s1812_s17  }
  0x48   : > { %p2592_p3 = scmp.ne.s32.totalorder %s2588_s20, 0 }
  0x49   : > { %p2593_p4 = scmp.eq.s32.totalorder (!%p2592_p3), %s1919_s29, 0 }
  0x4a   : > { %468 = sbr.rel (%p2592_p3) target bundleno = 1196 (0x4ac), region = 72 }
  0x4f   : > { %1776 = dma.done.wait (%p2593_p4), [#allocation3], 64   ;;  %p2594_p13 = pmov %p2593_p4 }
  0x50   : > { %p2595_p5 = pmov %p2593_p4 }
  0x51   : > { %1778 = vsyncadd (%p2594_p13), [#allocation3], 4294967232 }
  0x52   : > { %1780 = dma.done.wait (%p2595_p5), [#allocation6], 192   ;;  %p2596_p6 = pmov %p2593_p4 }
  0x53   : > { %p2597_p10 = pmov %p2593_p4 }
  0x54   : > { %1782 = vsyncadd (%p2596_p6), [#allocation6], 4294967104 }
  0x55   : > { %1784 = dma.done.wait (%p2597_p10), [#allocation9], 512   ;;  %p2598_p12 = pmov %p2593_p4 }
  0x56   : > { %p541_p7 = scmp.lt.s32.totalorder %s1919_s29, 1  ;;  %s2599_s0 = sld [smem:[#allocation17_spill]]  ;;  %v1819_v2 = vmov 0   ;;  %v769_v3 = vld [vmem:[%s2560_s5] sm:$0xff]  ;;  %v568_v8 = vlaneseq  ;;  %vm779_vm3 = vcmask 1043456   ;;  %vm775_vm9 = vcmask 588800  }
  0x57   : > { %1786 = vsyncadd (%p2598_p12), [#allocation9], 4294966784  ;;  %s1813_s15 = smov 32   ;;  %s1814_s21 = smov 34   ;;  %818 = vmatprep.mubr.bf16.mxu0 %v1819_v2  ;;  %1625 = vset.pattern.permute.xlu0 %v1819_v2  ;;  %vm1123_vm10 = vcmask 130048  }
  0x58   : > { %s2016_s20 = scalar_select %p541_p7, %s1919_s29, 1  ;;  %1626 = vset.pattern.permute.xlu1 %v1819_v2  ;;  %v569_v9 = vshrl.u32 %v568_v8, 7  ;;  %v2112_v12 = vand.u32 127, %v568_v8  ;;  %v1513_v13 = vld [vmem:[%s2566_s11 + $0x10] ss:$8 sm:$0x3] }
  0x59   : > { %s1815_s17 = smov 33   ;;  %s2573_s27 = smov 17   ;;  %v1511_v16 = vld [vmem:[%s2566_s11 + $0x6] ss:$8 sm:$0x3] }
  0x5a   : > { %s1526_s30 = sshll.u32 %s2016_s20, 4  ;;  %s1817_s16 = smov 18   ;;  %v2108_v10 = vsub.s32 0, %v569_v9  ;;  %v2110_v11 = vsub.s32 1, %v569_v9  ;;  %vm740_vm0 = vcmp.lt.s32.totalorder %v2112_v12, 34  ;;  %vm696_vm1 = vcmp.lt.s32.totalorder %v2112_v12, 32 }
  0x5b   : > { %s1818_s22 = smov 2   ;;  %s2575_s24 = smov 16   ;;  %v1512_v18 = vld [vmem:[%s2566_s11 + $0x7] ss:$8 sm:$0x3]  ;;  %vm718_vm2 = vcmp.lt.s32.totalorder %v2112_v12, 33 }
  0x5c   : > { %s545_s23 = scalar_lea.vmem %s2599_s0, %s1526_s30  ;;  %s550_s2 = scalar_lea.vmem %s2556_s1, %s1526_s30  ;;  %v749_v17 = vrot.slane %v1513_v13, %v2108_v10  ;;  %v753_v19 = vrot.slane %v1513_v13, %v2110_v11  ;;  %v705_v20 = vrot.slane %v1511_v16, %v2108_v10  ;;  %v709_v23 = vrot.slane %v1511_v16, %v2110_v11  ;;  %v1509_v43 = vld [vmem:[%s2566_s11 + $0x4] ss:$8 sm:$0x3]  ;;  %v1510_v44 = vld [vmem:[%s2566_s11 + $0x5] ss:$8 sm:$0x3] }
  0x5d   : > { %v2024_v0 = vld [vmem:[%s545_s23] sm:$0xff]  ;;  %v2028_v1 = vld [vmem:[%s545_s23 + $0x8] sm:$0xff]  ;;  %s2050_s23 = sshll.u32 %s2016_s20, 3  ;;  %s1822_s3 = smov 112   ;;  %v727_v26 = vrot.slane %v1512_v18, %v2108_v10  ;;  %v731_v29 = vrot.slane %v1512_v18, %v2110_v11  ;;  %vm652_vm4 = vcmp.lt.s32.totalorder %v2112_v12, 17  ;;  %v661_v49 = vrot.slane %v1509_v43, %v2108_v10 }
  0x5e   : > { %692 = vrot.lane.b32.xlu1 %v2024_v0, %s1813_s15  ;;  %736 = vrot.lane.b32.xlu0 %v2024_v0, %s1814_s21  ;;  %v2068_v5 = vld [vmem:[%s550_s2] sm:$0xff]  ;;  %v2072_v6 = vld [vmem:[%s550_s2 + $0x8] sm:$0xff]  ;;  %s1824_s0 = smov 127   ;;  %s2577_s2 = smov 15   ;;  %v665_v50 = vrot.slane %v1509_v43, %v2110_v11  ;;  %vm674_vm5 = vcmp.lt.s32.totalorder %v2112_v12, 18  ;;  %v683_v51 = vrot.slane %v1510_v44, %v2108_v10  ;;  %v687_v52 = vrot.slane %v1510_v44, %v2110_v11 }
  0x5f   : > { %s2600_s20 = smov 16   ;;  %s2601_s30 = smov 17   ;;  %v1507_v63 = vld [vmem:[%s2566_s11 + $0x2] ss:$8 sm:$0x3]  ;;  %vm608_vm6 = vcmp.lt.s32.totalorder %v2112_v12, 2 }
  0x60   : > { %v617_v13 = vrot.slane %v1507_v63, %v2108_v10  ;;  %vm630_vm7 = vcmp.lt.s32.totalorder %v2112_v12, 16  ;;  %v1506_v18 = vld [vmem:[%s2566_s11 + $0x1] ss:$8 sm:$0x3]  ;;  %vm586_vm8 = vcmp.lt.s32.totalorder %v2112_v12, 1  ;;  %vm1040_vm11 = vcmp.lt.s32.totalorder %v2112_v12, 112 }
  0x61   : > { %vm1010_vm12 = vcmp.lt.s32.totalorder %v2112_v12, 113  ;;  %vm980_vm13 = vcmp.lt.s32.totalorder %v2112_v12, 127  ;;  %vm904_vm14 = vcmp.lt.s32.totalorder %v2112_v12, 15  ;;  %vm1070_vm15 = vcmp.lt.s32.totalorder %v2112_v12, 111  ;;  %p2604_p11 = scmp.ne.s32.totalorder %s2586_s18, 0 }
  0x62   : > { %694 = vrot.lane.b32.xlu1 %v2028_v1, %s1813_s15  ;;  %738 = vrot.lane.b32.xlu0 %v2028_v1, %s1814_s21  ;;  %s1821_s15 = smov 1  }
  0x66   : > { %716 = vrot.lane.b32.xlu1 %v2028_v1, %s1815_s17  ;;  %714 = vrot.lane.b32.xlu0 %v2024_v0, %s1815_s17  ;;  %s562_s17 = scalar_lea.vmem %s2565_s10, %s2050_s23 }
  0x6a   : > { %650 = vrot.lane.b32.xlu1 %v2028_v1, %s2573_s27  ;;  %648 = vrot.lane.b32.xlu0 %v2024_v0, %s2573_s27  ;;  %s1823_s27 = smov 113  }
  0x6e   : > { %672 = vrot.lane.b32.xlu1 %v2028_v1, %s1817_s16  ;;  %670 = vrot.lane.b32.xlu0 %v2024_v0, %s1817_s16  ;;  %s554_s16 = scalar_lea.vmem %s2563_s8, %s2050_s23 }
  0x6f   : > { %v829_v4 = vld [vmem:[%s554_s16] sm:$0xff]  ;;  %s558_s16 = scalar_lea.vmem %s2564_s9, %s2050_s23  ;;  %s538_s23 = sand.u32 1, %s1797_s26  }
  0x70   : > { %v1170_v7 = vld [vmem:[%s558_s16] sm:$0xff] }
  0x72   : > { %606 = vrot.lane.b32.xlu1 %v2028_v1, %s1818_s22  ;;  %604 = vrot.lane.b32.xlu0 %v2024_v0, %s1818_s22 }
  0x76   : > { %628 = vrot.lane.b32.xlu1 %v2028_v1, %s2575_s24  ;;  %626 = vrot.lane.b32.xlu0 %v2024_v0, %s2575_s24  ;;  %s2579_s24 = smov 111  }
  0x7a   : > { %582 = vrot.lane.b32.xlu1 %v2028_v1, %s1821_s15  ;;  %580 = vrot.lane.b32.xlu0 %v2024_v0, %s1821_s15 }
  0x7e   : > { %772 = vperm.xlu0 %1625, %v769_v3   ;;  %832 = vperm.xlu1 %1626, %v829_v4   ;;  %v1508_v3 = vld [vmem:[%s2566_s11 + $0x3] ss:$8 sm:$0x3] }
  0x7f   : > { %v639_v16 = vrot.slane %v1508_v3, %v2108_v10 }
  0x82   : > { %1034 = vrot.lane.b32.xlu0 %v2068_v5, %s1822_s3 }
  0x86   : > { %1038 = vrot.lane.b32.xlu0 %v2072_v6, %s1822_s3 }
  0x8a   : > { %1004 = vrot.lane.b32.xlu0 %v2068_v5, %s1823_s27 }
  0x8e   : > { %1008 = vrot.lane.b32.xlu0 %v2072_v6, %s1823_s27 }
  0x92   : > { %974 = vrot.lane.b32.xlu0 %v2068_v5, %s1824_s0 }
  0x96   : > { %978 = vrot.lane.b32.xlu0 %v2072_v6, %s1824_s0 }
  0x9a   : > { %928 = vrot.lane.b32.xlu0 %v2068_v5, %s1821_s15 }
  0x9e   : > { %932 = vrot.lane.b32.xlu0 %v2072_v6, %s1821_s15 }
  0xa2   : > { %898 = vrot.lane.b32.xlu0 %v2068_v5, %s2577_s2 }
  0xa6   : > { %902 = vrot.lane.b32.xlu0 %v2072_v6, %s2577_s2  ;;  %s2602_s2 = smov 15  }
  0xaa   : > { %869 = vrot.lane.b32.xlu0 %v2068_v5, %s2600_s20 }
  0xae   : > { %873 = vrot.lane.b32.xlu0 %v2072_v6, %s2600_s20 }
  0xb2   : > { %841 = vrot.lane.b32.xlu0 %v2068_v5, %s2601_s30 }
  0xb6   : > { %845 = vrot.lane.b32.xlu0 %v2072_v6, %s2601_s30 }
  0xba   : > { %1064 = vrot.lane.b32.xlu0 %v2068_v5, %s2579_s24 }
  0xbe   : > { %1068 = vrot.lane.b32.xlu0 %v2072_v6, %s2579_s24  ;;  %s2603_s24 = smov 111  }
  0xc2   : > { %1173 = vperm.xlu0 %1625, %v1170_v7  }
  0xd0   : > { %v693_v14 = vpop.permute.xlu1 %692  ;;  %v737_v15 = vpop.permute.xlu0 %736 }
  0xd4   : > { %v695_v21 = vpop.permute.xlu1 %694  ;;  %v739_v22 = vpop.permute.xlu0 %738 }
  0xd5   : > { %v741_v24 = vsel %vm740_vm0, %v737_v15, %v739_v22  ;;  %v742_v25 = vsel %vm740_vm0, %v739_v22, %v737_v15  ;;  %v698_v27 = vsel %vm696_vm1, %v695_v21, %v693_v14  ;;  %v697_v31 = vsel %vm696_vm1, %v693_v14, %v695_v21  ;;  %v566_v14 = vld [vmem:[%s2566_s11] ss:$8 sm:$0x3] }
  0xd6   : > { %v756_v28 = vmul.f32 %v749_v17, %v742_v25  ;;  %v757_v30 = vmul.f32 %v753_v19, %v741_v24  ;;  %v712_v36 = vmul.f32 %v705_v20, %v698_v27  ;;  %v713_v39 = vmul.f32 %v709_v23, %v697_v31 }
  0xd7   : > { %v621_v15 = vrot.slane %v1507_v63, %v2110_v11  ;;  %v643_v17 = vrot.slane %v1508_v3, %v2110_v11  ;;  %v575_v23 = vrot.slane %v566_v14, %v2110_v11  ;;  %v571_v24 = vrot.slane %v566_v14, %v2108_v10 }
  0xd8   : > { %v717_v32 = vpop.permute.xlu1 %716  ;;  %v715_v33 = vpop.permute.xlu0 %714  ;;  %v767_v34 = vpack.c.bf16 %v757_v30, %v757_v30  ;;  %v766_v35 = vpack.c.bf16 %v756_v28, %v756_v28  ;;  %v595_v27 = vrot.slane %v1506_v18, %v2108_v10  ;;  %v599_v28 = vrot.slane %v1506_v18, %v2110_v11 }
  0xd9   : > { %v719_v37 = vsel %vm718_vm2, %v715_v33, %v717_v32  ;;  %v720_v38 = vsel %vm718_vm2, %v717_v32, %v715_v33 }
  0xda   : > { %v734_v40 = vmul.f32 %v727_v26, %v720_v38  ;;  %v735_v41 = vmul.f32 %v731_v29, %v719_v37  ;;  %1514 = vmatprep.subr.msk.bf16.mxu0 %vm779_vm3, %v767_v34  ;;  %v781_v42 = vsel %vm779_vm3, %v766_v35, 0  ;;  %v579_v37 = vmul.f32 %v575_v23, %v2028_v1 }
  0xdb   : > { %793 = vmatpush1.bf16.msra.mxu0 %v781_v42  ;;  %v578_v38 = vmul.f32 %v571_v24, %v2024_v0 }
  0xdc   : > { %v651_v45 = vpop.permute.xlu1 %650  ;;  %v649_v46 = vpop.permute.xlu0 %648  ;;  %v765_v47 = vpack.c.bf16 %v735_v41, %v713_v39  ;;  %v764_v48 = vpack.c.bf16 %v734_v40, %v712_v36 }
  0xdd   : > { %v653_v53 = vsel %vm652_vm4, %v649_v46, %v651_v45  ;;  %v654_v54 = vsel %vm652_vm4, %v651_v45, %v649_v46  ;;  %v768_v45 = vld [vmem:[#allocation2] sm:$0xf] }
  0xde   : > { %794 = vmatprep.subr.bf16.mxu0 %v765_v47  ;;  %v668_v59 = vmul.f32 %v661_v49, %v654_v54  ;;  %v669_v60 = vmul.f32 %v665_v50, %v653_v53 }
  0xdf   : > { %795 = vmatpush1.bf16.msra.mxu0 %v764_v48 }
  0xe0   : > { %v673_v55 = vpop.permute.xlu1 %672  ;;  %v671_v56 = vpop.permute.xlu0 %670 }
  0xe1   : > { %v675_v57 = vsel %vm674_vm5, %v671_v56, %v673_v55  ;;  %v676_v58 = vsel %vm674_vm5, %v673_v55, %v671_v56  ;;  %v2221_v55 = vld [vmem:[#allocation5] sm:$0xff] }
  0xe2   : > { %v690_v61 = vmul.f32 %v683_v51, %v676_v58  ;;  %v691_v62 = vmul.f32 %v687_v52, %v675_v57  ;;  %v1517_v56 = vcombine.high %v2221_v55, %v2221_v55  ;;  %v1111_v57 = vld [vmem:[%s2561_s6] sm:$0xff] }
  0xe4   : > { %v607_v4 = vpop.permute.xlu1 %606  ;;  %v605_v7 = vpop.permute.xlu0 %604  ;;  %v763_v8 = vpack.c.bf16 %v691_v62, %v669_v60  ;;  %v762_v9 = vpack.c.bf16 %v690_v61, %v668_v59  ;;  %1518 = vmatprep.mubr.msk.bf16.mxu1 %vm1123_vm10, %v1517_v56 }
  0xe5   : > { %v609_v19 = vsel %vm608_vm6, %v605_v7, %v607_v4  ;;  %v610_v20 = vsel %vm608_vm6, %v607_v4, %v605_v7 }
  0xe6   : > { %796 = vmatprep.subr.bf16.mxu0 %v763_v8  ;;  %v624_v29 = vmul.f32 %v617_v13, %v610_v20  ;;  %v625_v30 = vmul.f32 %v621_v15, %v609_v19 }
  0xe7   : > { %797 = vmatpush1.bf16.msra.mxu0 %v762_v9 }
  0xe8   : > { %v629_v21 = vpop.permute.xlu1 %628  ;;  %v627_v22 = vpop.permute.xlu0 %626 }
  0xe9   : > { %v631_v25 = vsel %vm630_vm7, %v627_v22, %v629_v21  ;;  %v632_v26 = vsel %vm630_vm7, %v629_v21, %v627_v22  ;;  %v1016_v21 = vld [vmem:[#allocation8 + $0x6] ss:$8 sm:$0x3] }
  0xea   : > { %v646_v31 = vmul.f32 %v639_v16, %v632_v26  ;;  %v647_v32 = vmul.f32 %v643_v17, %v631_v25  ;;  %v1046_v17 = vld [vmem:[#allocation8 + $0x7] ss:$8 sm:$0x3]  ;;  %v2261_v25 = vrot.slane %v1016_v21, %v2108_v10  ;;  %v2264_v26 = vrot.slane %v1016_v21, %v2110_v11 }
  0xeb   : > { %v2250_v20 = vrot.slane %v1046_v17, %v2108_v10  ;;  %v2256_v23 = vrot.slane %v1046_v17, %v2110_v11  ;;  %v939_v17 = vld [vmem:[#allocation8 + $0x3] ss:$8 sm:$0x3] }
  0xec   : > { %v583_v33 = vpop.permute.xlu1 %582  ;;  %v581_v34 = vpop.permute.xlu0 %580  ;;  %v761_v35 = vpack.c.bf16 %v647_v32, %v625_v30  ;;  %v760_v36 = vpack.c.bf16 %v646_v31, %v624_v29 }
  0xed   : > { %v587_v39 = vsel %vm586_vm8, %v581_v34, %v583_v33  ;;  %v588_v40 = vsel %vm586_vm8, %v583_v33, %v581_v34 }
  0xee   : > { %v602_v41 = vmul.f32 %v595_v27, %v588_v40  ;;  %v603_v42 = vmul.f32 %v599_v28, %v587_v39  ;;  %798 = vmatprep.subr.bf16.mxu0 %v761_v35  ;;  %v986_v27 = vld [vmem:[#allocation8 + $0x5] ss:$8 sm:$0x3] }
  0xef   : > { %799 = vmatpush1.bf16.msra.mxu0 %v760_v36  ;;  %v2286_v40 = vrot.slane %v986_v27, %v2110_v11 }
  0xf0   : > { %v759_v43 = vpack.c.bf16 %v603_v42, %v579_v37  ;;  %v758_v44 = vpack.c.bf16 %v602_v41, %v578_v38  ;;  %v2282_v38 = vrot.slane %v986_v27, %v2108_v10  ;;  %v910_v27 = vld [vmem:[#allocation8 + $0x2] ss:$8 sm:$0x3] }
  0xf2   : > { %800 = vmatprep.subr.bf16.mxu0 %v759_v43 }
  0xf3   : > { %801 = vmatpush1.bf16.msra.mxu0 %v758_v44 }
  0xf6   : > { %1515 = vmatmul.mubr.msk.bf16.vlgmr.msra.gmra.mxu0 %vm775_vm9, %v768_v45 }
  0xf7   : > { %1302 = vmatprep.mubr.bf16.mxu0 %v1819_v2 }
  0xf9   : > { %v773_v0 = vpop.permute.xlu0 %772  ;;  %v833_v48 = vpop.permute.xlu1 %832 }
  0xfd   : > { %v1035_v58 = vpop.permute.xlu0 %1034 }
 0x101   : > { %v1039_v59 = vpop.permute.xlu0 %1038 }
 0x102   : > { %v1042_v22 = vsel %vm1040_vm11, %v1035_v58, %v1039_v59  ;;  %v1044_v24 = vsel %vm1040_vm11, %v1039_v59, %v1035_v58 }
 0x103   : > { %v1060_v30 = vmul.f32 %v2250_v20, %v1042_v22  ;;  %v1061_v37 = vmul.f32 %v2256_v23, %v1044_v24 }
 0x105   : > { %v1005_v60 = vpop.permute.xlu0 %1004 }
 0x109   : > { %v1009_v61 = vpop.permute.xlu0 %1008 }
 0x10a   : > { %v1012_v31 = vsel %vm1010_vm12, %v1005_v60, %v1009_v61  ;;  %v1014_v34 = vsel %vm1010_vm12, %v1009_v61, %v1005_v60 }
 0x10b   : > { %v1030_v39 = vmul.f32 %v2261_v25, %v1012_v31  ;;  %v1031_v44 = vmul.f32 %v2264_v26, %v1014_v34  ;;  %v2346_v34 = vrot.slane %v910_v27, %v2110_v11 }
 0x10d   : > { %v975_v62 = vpop.permute.xlu0 %974 }
 0x111   : > { %v979_v63 = vpop.permute.xlu0 %978 }
 0x112   : > { %v982_v45 = vsel %vm980_vm13, %v975_v62, %v979_v63 }
 0x115   : > { %v2232_v4 = vpop.permute.xlu0 %928 }
 0x119   : > { %v2234_v9 = vpop.permute.xlu0 %932 }
 0x11d   : > { %v2238_v14 = vpop.permute.xlu0 %898 }
 0x121   : > { %v2244_v18 = vpop.permute.xlu0 %902 }
 0x125   : > { %v2267_v28 = vpop.permute.xlu0 %869 }
 0x1b6   : > { %v820_v1 = vpop.f32.mrf.mxu0 }
 0x1b7   : > { %v821_v46 = vadd.f32 %v820_v1, %v773_v0 }
 0x1b8   : > { %v822_v47 = vpop.f32.mrf.mxu0 }
 0x1b9   : > { %v827_v49 = vmax.f32 %v821_v46, 0.0  ;;  %v823_v2 = vadd.f32 %v822_v47, %v773_v0  ;;  %v956_v46 = vld [vmem:[#allocation8 + $0x4] ss:$8 sm:$0x3]  ;;  %v984_v47 = vsel %vm980_vm13, %v979_v63, %v975_v62 }
 0x1ba   : > { %v824_v50 = vpop.f32.mrf.mxu0  ;;  %v1001_v58 = vmul.f32 %v2286_v40, %v984_v47  ;;  %v2311_v61 = vrot.slane %v956_v46, %v2108_v10 }
 0x1bb   : > { %v2189_v51 = vadd.f32 %v833_v48, %v827_v49  ;;  %v828_v53 = vmax.f32 %v823_v2, 0.0  ;;  %v1000_v2 = vmul.f32 %v2282_v38, %v982_v45 }
 0x1bc   : > { %v825_v52 = vpop.f32.mrf.mxu0 }
 0x1bd   : > { %1032 = vrot.lane.b32.xlu1 %v2189_v51, %s1822_s3  ;;  %v2205_v54 = vadd.f32 %v833_v48, %v828_v53  ;;  %v2297_v48 = vpop.permute.xlu0 %873  ;;  %v2302_v52 = vrot.slane %v956_v46, %v2110_v11 }
 0x1c1   : > { %1002 = vrot.lane.b32.xlu1 %v2189_v51, %s1823_s27  ;;  %v2319_v21 = vpop.permute.xlu0 %841 }
 0x1c5   : > { %972 = vrot.lane.b32.xlu1 %v2189_v51, %s1824_s0 }
 0x1c9   : > { %926 = vrot.lane.b32.xlu1 %v2189_v51, %s1821_s15 }
 0x1cd   : > { %896 = vrot.lane.b32.xlu1 %v2189_v51, %s2602_s2 }
 0x1d1   : > { %867 = vrot.lane.b32.xlu1 %v2189_v51, %s2600_s20 }
 0x1d5   : > { %839 = vrot.lane.b32.xlu1 %v2189_v51, %s2601_s30 }
 0x1d9   : > { %1036 = vrot.lane.b32.xlu1 %v2205_v54, %s1822_s3 }
 0x1dd   : > { %1006 = vrot.lane.b32.xlu1 %v2205_v54, %s1823_s27 }
 0x1e1   : > { %976 = vrot.lane.b32.xlu1 %v2205_v54, %s1824_s0 }
 0x1e5   : > { %1062 = vrot.lane.b32.xlu1 %v2189_v51, %s2603_s24 }
 0x1e9   : > { %930 = vrot.lane.b32.xlu1 %v2205_v54, %s1821_s15 }
 0x1ed   : > { %900 = vrot.lane.b32.xlu1 %v2205_v54, %s2602_s2 }
 0x1f1   : > { %871 = vrot.lane.b32.xlu1 %v2205_v54, %s2600_s20 }
 0x1f5   : > { %843 = vrot.lane.b32.xlu1 %v2205_v54, %s2601_s30 }
 0x1f9   : > { %1066 = vrot.lane.b32.xlu1 %v2205_v54, %s2603_s24 }
 0x1fd   : > { %1114 = vperm.xlu1 %1626, %v1111_v57  }
 0x22f   : > { %v1033_v3 = vpop.permute.xlu1 %1032 }
 0x233   : > { %v1003_v7 = vpop.permute.xlu1 %1002 }
 0x237   : > { %v973_v8 = vpop.permute.xlu1 %972 }
 0x23b   : > { %v2236_v13 = vpop.permute.xlu1 %926 }
 0x23f   : > { %v2240_v15 = vpop.permute.xlu1 %896 }
 0x243   : > { %v2242_v16 = vpop.permute.xlu1 %867 }
 0x247   : > { %v2247_v19 = vpop.permute.xlu1 %839 }
 0x24b   : > { %v1037_v29 = vpop.permute.xlu1 %1036 }
 0x24c   : > { %v1041_v32 = vsel %vm1040_vm11, %v1033_v3, %v1037_v29  ;;  %v1043_v33 = vsel %vm1040_vm11, %v1037_v29, %v1033_v3  ;;  %v969_v3 = vmul.f32 %v2302_v52, %v2205_v54  ;;  %v968_v29 = vmul.f32 %v2311_v61, %v2189_v51 }
 0x24d   : > { %v1058_v35 = vmul.f32 %v2250_v20, %v1041_v32  ;;  %v1059_v36 = vmul.f32 %v2256_v23, %v1043_v33  ;;  %v2328_v54 = vrot.slane %v939_v17, %v2108_v10  ;;  %v935_v32 = vsel %vm586_vm8, %v2232_v4, %v2234_v9 }
 0x24e   : > { %v937_v51 = vsel %vm586_vm8, %v2234_v9, %v2232_v4 }
 0x24f   : > { %v1007_v41 = vpop.permute.xlu1 %1006  ;;  %v1107_v42 = vpack.c.bf16 %v1061_v37, %v1059_v36  ;;  %v1106_v43 = vpack.c.bf16 %v1060_v30, %v1058_v35  ;;  %v970_v30 = vmul.f32 %v2311_v61, %v2068_v5  ;;  %v2343_v5 = vrot.slane %v910_v27, %v2108_v10 }
 0x250   : > { %v1011_v0 = vsel %vm1010_vm12, %v1003_v7, %v1007_v41  ;;  %v1013_v1 = vsel %vm1010_vm12, %v1007_v41, %v1003_v7  ;;  %v971_v7 = vmul.f32 %v2302_v52, %v2072_v6  ;;  %v2331_v6 = vrot.slane %v939_v17, %v2110_v11  ;;  %v846_v41 = vpop.permute.xlu0 %845 }
 0x251   : > { %v1028_v49 = vmul.f32 %v2261_v25, %v1011_v0  ;;  %v1029_v50 = vmul.f32 %v2264_v26, %v1013_v1  ;;  %1127 = vmatprep.subr.bf16.mxu1 %v1107_v42  ;;  %v1100_v4 = vpack.c.bf16 %v970_v30, %v968_v29  ;;  %v953_v9 = vmul.f32 %v2328_v54, %v937_v51 }
 0x252   : > { %1128 = vmatpush1.bf16.msra.mxu1 %v1106_v43  ;;  %v1101_v31 = vpack.c.bf16 %v971_v7, %v969_v3  ;;  %v954_v37 = vmul.f32 %v2331_v6, %v935_v32  ;;  %v848_v29 = vsel %vm652_vm4, %v2319_v21, %v846_v41  ;;  %v850_v30 = vsel %vm652_vm4, %v846_v41, %v2319_v21 }
 0x253   : > { %v977_v53 = vpop.permute.xlu1 %976  ;;  %v1105_v56 = vpack.c.bf16 %v1031_v44, %v1029_v50  ;;  %v1104_v57 = vpack.c.bf16 %v1030_v39, %v1028_v49  ;;  %v880_v39 = vld [vmem:[#allocation8 + $0x1] ss:$8 sm:$0x3]  ;;  %v906_v44 = vsel %vm904_vm14, %v2238_v14, %v2244_v18 }
 0x254   : > { %v981_v59 = vsel %vm980_vm13, %v973_v8, %v977_v53  ;;  %v983_v60 = vsel %vm980_vm13, %v977_v53, %v973_v8  ;;  %v2367_v46 = vrot.slane %v880_v39, %v2108_v10  ;;  %v2370_v47 = vrot.slane %v880_v39, %v2110_v11 }
 0x255   : > { %v998_v62 = vmul.f32 %v2282_v38, %v981_v59  ;;  %v999_v63 = vmul.f32 %v2286_v40, %v983_v60  ;;  %1129 = vmatprep.subr.bf16.mxu1 %v1105_v56 }
 0x256   : > { %1130 = vmatpush1.bf16.msra.mxu1 %v1104_v57  ;;  %v876_v57 = vsel %vm630_vm7, %v2267_v28, %v2297_v48 }
 0x257   : > { %v2321_v22 = vpop.permute.xlu1 %1062  ;;  %v1103_v8 = vpack.c.bf16 %v1001_v58, %v999_v63  ;;  %v1102_v24 = vpack.c.bf16 %v1000_v2, %v998_v62  ;;  %v851_v2 = vld [vmem:[#allocation8] ss:$8 sm:$0x3]  ;;  %v1065_v58 = vpop.permute.xlu0 %1064 }
 0x258   : > { %v2391_v63 = vrot.slane %v851_v2, %v2108_v10  ;;  %v2394_v3 = vrot.slane %v851_v2, %v2110_v11 }
 0x259   : > { %1131 = vmatprep.subr.bf16.mxu1 %v1103_v8  ;;  %v1076_v8 = vld [vmem:[#allocation8 + $0x10] ss:$8 sm:$0x3] }
 0x25a   : > { %1132 = vmatpush1.bf16.msra.mxu1 %v1102_v24  ;;  %v2414_v51 = vrot.slane %v1076_v8, %v2108_v10 }
 0x25b   : > { %1133 = vmatprep.subr.bf16.mxu1 %v1101_v31  ;;  %v931_v33 = vpop.permute.xlu1 %930 }
 0x25c   : > { %v934_v35 = vsel %vm586_vm8, %v2236_v13, %v931_v33  ;;  %v936_v36 = vsel %vm586_vm8, %v931_v33, %v2236_v13  ;;  %v908_v13 = vsel %vm904_vm14, %v2244_v18, %v2238_v14  ;;  %v925_v18 = vmul.f32 %v2346_v34, %v906_v44 }
 0x25d   : > { %v951_v42 = vmul.f32 %v2328_v54, %v936_v36  ;;  %v952_v43 = vmul.f32 %v2331_v6, %v934_v35  ;;  %v924_v14 = vmul.f32 %v2343_v5, %v908_v13  ;;  %v2417_v33 = vrot.slane %v1076_v8, %v2110_v11 }
 0x25e   : > { %1134 = vmatpush1.bf16.msra.mxu1 %v1100_v4  ;;  %v865_v36 = vmul.f32 %v2391_v63, %v850_v30  ;;  %v866_v4 = vmul.f32 %v2394_v3, %v848_v29 }
 0x25f   : > { %v901_v45 = vpop.permute.xlu1 %900  ;;  %v1099_v0 = vpack.c.bf16 %v954_v37, %v952_v43  ;;  %v1098_v1 = vpack.c.bf16 %v953_v9, %v951_v42  ;;  %v1069_v9 = vpop.permute.xlu0 %1068 }
 0x260   : > { %v905_v49 = vsel %vm904_vm14, %v2240_v15, %v901_v45  ;;  %v907_v50 = vsel %vm904_vm14, %v901_v45, %v2240_v15  ;;  %v878_v15 = vsel %vm630_vm7, %v2297_v48, %v2267_v28  ;;  %v895_v48 = vmul.f32 %v2370_v47, %v876_v57 }
 0x261   : > { %v922_v53 = vmul.f32 %v2343_v5, %v907_v50  ;;  %v923_v56 = vmul.f32 %v2346_v34, %v905_v49  ;;  %1135 = vmatprep.subr.bf16.mxu1 %v1099_v0  ;;  %v894_v28 = vmul.f32 %v2367_v46, %v878_v15  ;;  %v1072_v11 = vsel %vm1070_vm15, %v1065_v58, %v1069_v9 }
 0x262   : > { %1136 = vmatpush1.bf16.msra.mxu1 %v1098_v1  ;;  %v1074_v39 = vsel %vm1070_vm15, %v1069_v9, %v1065_v58  ;;  %v1090_v13 = vmul.f32 %v2414_v51, %v1072_v11 }
 0x263   : > { %v872_v59 = vpop.permute.xlu1 %871  ;;  %v1097_v60 = vpack.c.bf16 %v925_v18, %v923_v56  ;;  %v1096_v62 = vpack.c.bf16 %v924_v14, %v922_v53  ;;  %v1091_v45 = vmul.f32 %v2417_v33, %v1074_v39  ;;  %v1516_v14 = vcombine.low %v2221_v55, %v2221_v55  ;;  %v1174_v15 = vpop.permute.xlu0 %1173  ;;  %v1255_v55 = vld [vmem:[%s2562_s7] sm:$0xff] }
 0x264   : > { %v875_v7 = vsel %vm630_vm7, %v2242_v16, %v872_v59  ;;  %v877_v17 = vsel %vm630_vm7, %v872_v59, %v2242_v16 }
 0x265   : > { %v892_v24 = vmul.f32 %v2367_v46, %v877_v17  ;;  %v893_v27 = vmul.f32 %v2370_v47, %v875_v7  ;;  %1137 = vmatprep.subr.bf16.mxu1 %v1097_v60  ;;  %v1313_v17 = vld [vmem:[%s562_s17] sm:$0xff] }
 0x266   : > { %1138 = vmatpush1.bf16.msra.mxu1 %v1096_v62 }
 0x267   : > { %v844_v16 = vpop.permute.xlu1 %843  ;;  %v1095_v31 = vpack.c.bf16 %v895_v48, %v893_v27  ;;  %v1094_v32 = vpack.c.bf16 %v894_v28, %v892_v24 }
 0x268   : > { %v847_v35 = vsel %vm652_vm4, %v2247_v19, %v844_v16  ;;  %v849_v21 = vsel %vm652_vm4, %v844_v16, %v2247_v19 }
 0x269   : > { %v863_v37 = vmul.f32 %v2391_v63, %v849_v21  ;;  %v864_v10 = vmul.f32 %v2394_v3, %v847_v35  ;;  %1139 = vmatprep.subr.bf16.mxu1 %v1095_v31 }
 0x26a   : > { %1140 = vmatpush1.bf16.msra.mxu1 %v1094_v32 }
 0x26b   : > { %v1067_v41 = vpop.permute.xlu1 %1066  ;;  %v1093_v42 = vpack.c.bf16 %v866_v4, %v864_v10  ;;  %v1092_v19 = vpack.c.bf16 %v865_v36, %v863_v37 }
 0x26c   : > { %v1071_v43 = vsel %vm1070_vm15, %v2321_v22, %v1067_v41  ;;  %v1073_v44 = vsel %vm1070_vm15, %v1067_v41, %v2321_v22 }
 0x26d   : > { %v1088_v0 = vmul.f32 %v2414_v51, %v1071_v43  ;;  %v1089_v1 = vmul.f32 %v2417_v33, %v1073_v44  ;;  %1141 = vmatprep.subr.bf16.mxu1 %v1093_v42 }
 0x26e   : > { %1142 = vmatpush1.bf16.msra.mxu1 %v1092_v19 }
 0x26f   : > { %v1109_v49 = vpack.c.bf16 %v1091_v45, %v1089_v1  ;;  %v1108_v50 = vpack.c.bf16 %v1090_v13, %v1088_v0 }
 0x271   : > { %1157 = vmatprep.subr.bf16.mxu1 %v1109_v49 }
 0x272   : > { %1158 = vmatpush2.bf16.msra.mxu1 %v1108_v50 }
 0x275   : > { %1160 = vmatmul.mubr.bf16.vlgmr.msra.gmra.mxu1 %v1516_v14 }
 0x278   : > { %v1115_v18 = vpop.permute.xlu1 %1114 }
 0x335   : > { %v1161_v22 = vpop.f32.mrf.mxu1 }
 0x336   : > { %v1162_v2 = vadd.f32 %v1161_v22, %v1115_v18 }
 0x337   : > { %v1163_v53 = vpop.f32.mrf.mxu1 }
 0x338   : > { %v1168_v56 = vmax.f32 %v1162_v2, 0.0  ;;  %v1164_v57 = vadd.f32 %v1163_v53, %v1115_v18 }
 0x339   : > { %v1165_v58 = vpop.f32.mrf.mxu1 }
 0x33a   : > { %v1176_v59 = vadd.f32 %v1174_v15, %v1168_v56  ;;  %v1169_v60 = vmax.f32 %v1164_v57, 0.0 }
 0x33b   : > { %v1166_v62 = vpop.f32.mrf.mxu1 }
 0x33c   : > { %v1177_v7 = vadd.f32 %v1174_v15, %v1169_v60  ;;  %1236 = vrot.lane.b32.xlu1 %v1176_v59, %s2603_s24  ;;  %v1210_v45 = vmul.f32 %v1176_v59, %v2311_v61 }
 0x33e   : > { %1238 = vrot.lane.b32.xlu0 %v1177_v7, %s2603_s24 }
 0x340   : > { %1220 = vrot.lane.b32.xlu1 %v1176_v59, %s1823_s27 }
 0x342   : > { %1222 = vrot.lane.b32.xlu0 %v1177_v7, %s1823_s27  ;;  %s1324_s27 = scalar_lea.sflag [#allocation4], %s538_s23 }
 0x344   : > { %1228 = vrot.lane.b32.xlu1 %v1176_v59, %s1822_s3 }
 0x346   : > { %1230 = vrot.lane.b32.xlu0 %v1177_v7, %s1822_s3 }
 0x348   : > { %1212 = vrot.lane.b32.xlu1 %v1176_v59, %s1824_s0 }
 0x34a   : > { %1214 = vrot.lane.b32.xlu0 %v1177_v7, %s1824_s0 }
 0x34c   : > { %1194 = vrot.lane.b32.xlu1 %v1176_v59, %s2602_s2 }
 0x34e   : > { %1196 = vrot.lane.b32.xlu0 %v1177_v7, %s2602_s2 }
 0x350   : > { %1202 = vrot.lane.b32.xlu1 %v1176_v59, %s1821_s15 }
 0x352   : > { %1204 = vrot.lane.b32.xlu0 %v1177_v7, %s1821_s15  ;;  %s1498_s15 = sshll.u32 %s538_s23, 4 }
 0x354   : > { %1178 = vrot.lane.b32.xlu1 %v1176_v59, %s2601_s30 }
 0x356   : > { %1180 = vrot.lane.b32.xlu0 %v1177_v7, %s2601_s30  ;;  %s540_s30 = scalar_lea.vmem [#allocation10], %s1498_s15 }
 0x357   : > { %s1338_s2 = sshll.u32 %s540_s30, 4  ;;  %s1339_s2 = int_to_ptr.vmem [resolvable:$true] %s1338_s2 }
 0x358   : > { %1186 = vrot.lane.b32.xlu1 %v1176_v59, %s2600_s20  ;;  %s1733_s3 = scalar_lea.vmem %s1339_s2, 256 }
 0x359   : > { %p1734_p8 = scmp.ne.s32.totalorder %s1339_s2, %s1733_s3 }
 0x35a   : > { %1188 = vrot.lane.b32.xlu0 %v1177_v7, %s2600_s20  ;;  %s1528_s20 = sshll.u32 %s1919_s29, 8  ;;  %s1827_s29 = smov [#allocation10]  }
 0x35b   : > { %s1336_s21 = scalar_lea.hbm %s2568_s13, %s1528_s20  ;;  %p1735_p0 = pnand %p1734_p8, %p2604_p11 }
 0x35c   : > { %1258 = vperm.xlu1 %1626, %v1255_v55   ;;  %s1737_s17 = sshll.u32 %s1827_s29, 4  ;;  %s1738_s17 = int_to_ptr.vmem [resolvable:$false] %s1737_s17 }
 0x35d   : > { %p1736_p1 = pneg %p1735_p0  ;;  %s1739_s16 = scalar_lea.vmem %s1738_s17, 512 }
 0x35e   : > { %1316 = vperm.xlu0 %1625, %v1313_v17   ;;  %p1740_p2 = scmp.lt.s32.totalorder %s1339_s2, %s1738_s17  ;;  %p1741_p9 = scmp.lt.s32.totalorder %s1739_s16, %s1733_s3 }
 0x360   : > { %p1742_p3 = por %p1741_p9, %p1740_p2 }
 0x362   : > { %p1743_p4 = pnand %p1742_p3, %p1736_p1 }
 0x3ae   : > { %v1237_v28 = vpop.permute.xlu1 %1236 }
 0x3b0   : > { %v1239_v48 = vpop.permute.xlu0 %1238 }
 0x3b1   : > { %v1240_v8 = vsel %vm1070_vm15, %v1237_v28, %v1239_v48  ;;  %v1241_v24 = vsel %vm1070_vm15, %v1239_v48, %v1237_v28 }
 0x3b2   : > { %v1242_v27 = vmul.f32 %v1240_v8, %v2414_v51  ;;  %v1243_v29 = vmul.f32 %v1241_v24, %v2417_v33  ;;  %v1221_v30 = vpop.permute.xlu1 %1220  ;;  %v1254_v8 = vld [vmem:[#allocation7] sm:$0xf] }
 0x3b4   : > { %v1252_v16 = vpack.c.bf16 %v1242_v27, %v1242_v27  ;;  %v1253_v31 = vpack.c.bf16 %v1243_v29, %v1243_v29  ;;  %v1223_v32 = vpop.permute.xlu0 %1222 }
 0x3b5   : > { %v1224_v36 = vsel %vm1010_vm12, %v1221_v30, %v1223_v32  ;;  %v1225_v4 = vsel %vm1010_vm12, %v1223_v32, %v1221_v30 }
 0x3b6   : > { %1519 = vmatprep.subr.msk.bf16.mxu0 %vm779_vm3, %v1253_v31  ;;  %v1229_v35 = vpop.permute.xlu1 %1228  ;;  %v1265_v21 = vsel %vm779_vm3, %v1252_v16, 0  ;;  %v1226_v37 = vmul.f32 %v1224_v36, %v2261_v25  ;;  %v1227_v10 = vmul.f32 %v1225_v4, %v2264_v26 }
 0x3b7   : > { %1277 = vmatpush1.bf16.msra.mxu0 %v1265_v21 }
 0x3b8   : > { %v1231_v9 = vpop.permute.xlu0 %1230 }
 0x3b9   : > { %v1232_v51 = vsel %vm1040_vm11, %v1229_v35, %v1231_v9  ;;  %v1233_v33 = vsel %vm1040_vm11, %v1231_v9, %v1229_v35 }
 0x3ba   : > { %v1234_v11 = vmul.f32 %v1232_v51, %v2250_v20  ;;  %v1235_v39 = vmul.f32 %v1233_v33, %v2256_v23  ;;  %v1213_v41 = vpop.permute.xlu1 %1212  ;;  %v1211_v23 = vmul.f32 %v1177_v7, %v2302_v52 }
 0x3bc   : > { %v1250_v42 = vpack.c.bf16 %v1234_v11, %v1226_v37  ;;  %v1215_v19 = vpop.permute.xlu0 %1214  ;;  %v1251_v43 = vpack.c.bf16 %v1235_v39, %v1227_v10 }
 0x3bd   : > { %v1216_v44 = vsel %vm980_vm13, %v1213_v41, %v1215_v19  ;;  %v1217_v13 = vsel %vm980_vm13, %v1215_v19, %v1213_v41 }
 0x3be   : > { %v1218_v25 = vmul.f32 %v1216_v44, %v2282_v38  ;;  %v1219_v26 = vmul.f32 %v1217_v13, %v2286_v40  ;;  %1278 = vmatprep.subr.bf16.mxu0 %v1251_v43  ;;  %v1195_v20 = vpop.permute.xlu1 %1194 }
 0x3bf   : > { %1279 = vmatpush1.bf16.msra.mxu0 %v1250_v42 }
 0x3c0   : > { %v1248_v0 = vpack.c.bf16 %v1218_v25, %v1210_v45  ;;  %v1197_v1 = vpop.permute.xlu0 %1196  ;;  %v1249_v49 = vpack.c.bf16 %v1219_v26, %v1211_v23 }
 0x3c1   : > { %v1198_v14 = vsel %vm904_vm14, %v1195_v20, %v1197_v1  ;;  %v1199_v61 = vsel %vm904_vm14, %v1197_v1, %v1195_v20 }
 0x3c2   : > { %1280 = vmatprep.subr.bf16.mxu0 %v1249_v49  ;;  %v1203_v50 = vpop.permute.xlu1 %1202  ;;  %v1200_v18 = vmul.f32 %v1199_v61, %v2343_v5  ;;  %v1201_v22 = vmul.f32 %v1198_v14, %v2346_v34 }
 0x3c3   : > { %1281 = vmatpush1.bf16.msra.mxu0 %v1248_v0 }
 0x3c4   : > { %v1205_v38 = vpop.permute.xlu0 %1204 }
 0x3c5   : > { %v1206_v40 = vsel %vm586_vm8, %v1203_v50, %v1205_v38  ;;  %v1207_v52 = vsel %vm586_vm8, %v1205_v38, %v1203_v50 }
 0x3c6   : > { %v1208_v2 = vmul.f32 %v1207_v52, %v2328_v54  ;;  %v1209_v53 = vmul.f32 %v1206_v40, %v2331_v6  ;;  %v1179_v56 = vpop.permute.xlu1 %1178 }
 0x3c8   : > { %v1246_v57 = vpack.c.bf16 %v1208_v2, %v1200_v18  ;;  %v1181_v15 = vpop.permute.xlu0 %1180  ;;  %v1247_v58 = vpack.c.bf16 %v1209_v53, %v1201_v22 }
 0x3c9   : > { %v1182_v59 = vsel %vm652_vm4, %v1179_v56, %v1181_v15  ;;  %v1183_v60 = vsel %vm652_vm4, %v1181_v15, %v1179_v56 }
 0x3ca   : > { %1282 = vmatprep.subr.bf16.mxu0 %v1247_v58  ;;  %v1187_v5 = vpop.permute.xlu1 %1186  ;;  %v1184_v34 = vmul.f32 %v1183_v60, %v2391_v63  ;;  %v1185_v7 = vmul.f32 %v1182_v59, %v2394_v3 }
 0x3cb   : > { %1283 = vmatpush1.bf16.msra.mxu0 %v1246_v57 }
 0x3cc   : > { %v1189_v62 = vpop.permute.xlu0 %1188 }
 0x3cd   : > { %v1190_v54 = vsel %vm630_vm7, %v1187_v5, %v1189_v62  ;;  %v1191_v6 = vsel %vm630_vm7, %v1189_v62, %v1187_v5 }
 0x3ce   : > { %v1192_v55 = vmul.f32 %v1191_v6, %v2367_v46  ;;  %v1193_v17 = vmul.f32 %v1190_v54, %v2370_v47 }
 0x3d0   : > { %v1244_v28 = vpack.c.bf16 %v1192_v55, %v1184_v34  ;;  %v1245_v48 = vpack.c.bf16 %v1193_v17, %v1185_v7 }
 0x3d2   : > { %1284 = vmatprep.subr.bf16.mxu0 %v1245_v48 }
 0x3d3   : > { %1285 = vmatpush1.bf16.msra.mxu0 %v1244_v28 }
 0x3d6   : > { %1520 = vmatmul.mubr.msk.bf16.vlgmr.msra.gmra.mxu0 %vm775_vm9, %v1254_v8 }
 0x3d7   : > { %v1259_v12 = vpop.permute.xlu1 %1258 }
 0x3d9   : > { %v1317_v30 = vpop.permute.xlu0 %1316 }
 0x496   : > { %v1304_v24 = vpop.f32.mrf.mxu0 }
 0x497   : > { %v1305_v27 = vadd.f32 %v1304_v24, %v1259_v12 }
 0x498   : > { %v1306_v63 = vpop.f32.mrf.mxu0 }
 0x499   : > { %v1311_v29 = vmax.f32 %v1305_v27, 0.0  ;;  %v1307_v3 = vadd.f32 %v1306_v63, %v1259_v12 }
 0x49a   : > { %v1308_v46 = vpop.f32.mrf.mxu0 }
 0x49b   : > { %v1319_v47 = vadd.f32 %v1317_v30, %v1311_v29  ;;  %v1312_v16 = vmax.f32 %v1307_v3, 0.0 }
 0x49c   : > { %v1309_v31 = vpop.f32.mrf.mxu0 }
 0x49d   : > { %1321 = vst [vmem:[%s540_s30] sm:$0xff] %v1319_v47  ;;  %v1320_v32 = vadd.f32 %v1317_v30, %v1312_v16 }
 0x49f   : > { %1322 = vst [vmem:[%s540_s30 + $0x8] sm:$0xff] %v1320_v32 }
 0x4a0   : > { %1746 = shalt.err (!%p1743_p4)
}
 0x4a1   : > { %s1747_s0 = scalar_lea.hbm %s1336_s21, 256  ;;  %s1751_s20 = scalar_lea.hbm %s2568_s13, 512 }
 0x4a2   : > { %p1748_p13 = scmp.ne.s32.totalorder %s1336_s21, %s1747_s0  ;;  %p1752_p10 = scmp.lt.s32.totalorder %s1336_s21, %s2568_s13 }
 0x4a3   : > { %p1753_p12 = scmp.lt.s32.totalorder %s1751_s20, %s1747_s0 }
 0x4a4   : > { %p1749_p5 = pnand %p1748_p13, %p2604_p11 }
 0x4a5   : > { %p1754_p7 = por %p1753_p12, %p1752_p10 }
 0x4a6   : > { %p1750_p6 = pneg %p1749_p5 }
 0x4a8   : > { %p1755_p8 = pnand %p1754_p7, %p1750_p6 }
 0x4aa   : > { %1758 = shalt.err (!%p1755_p8)
}
 0x4ab   : > { %1545 = dma.vmem_to_hbm [thread:$0]  (%p2604_p11), %s1339_s2, 256, %s1336_s21, %s1324_s27  }
 0x4ac PF: > { %p1572_p0 = scmp.ge.s32.totalorder %s1805_s28, 2  ;;  %s1350_s22 = sand.u32 1, %s1793_s25  }
 0x4ad   : > { %p2605_p1 = scmp.ne.s32.totalorder %s2587_s19, 0  ;;  %s1351_s3 = scalar_lea.sflag [#allocation4], %s1350_s22 }
 0x4af   : > { %p1561_p2 = pnand %p1572_p0, %p2605_p1 }
 0x4b1   : > { %p1562_p9 = pneg %p1561_p2 }
 0x4b3   : > { %1788 = dma.done.wait (%p1562_p9), %s1351_s3, 256  }
 0x4b4   : > { %1790 = vsyncadd (%p1562_p9), %s1351_s3, 4294967040  ;;  %s2606_s29 = sld [smem:[#allocation15_spill]]  ;;  %p26_p3 = scmp.ge.s32.totalorder %s1923_s14, 4  }
 0x4b5   : > { %s2607_s27 = sld [smem:[#allocation16_spill]]  ;;  %s2608_s25 = smov %s1797_s26 }
 0x4b6   : > { %s2610_s28 = smov %s1923_s14  ;;  %28 = sbr.rel (!%p26_p3) target bundleno = 10 (0xa), region = 152 }
 0x4ba   : > { %s2609_s26 = smov %s2606_s29 }
 0x4bb   :  { %1356 = vsyncpa [#allocation3], 1 }
 0x4bc   :  { %1358 = vsyncpa [#allocation3 + $0x1], 1 }
 0x4bd   :  { %1359 = vsyncpa [#allocation6], 1 }
 0x4be   :  { %1360 = vsyncpa [#allocation9], 1 }
 0x4bf   :  { %1361 = vsyncpa [#allocation4], 1 }
 0x4c0   :  { %1363 = vsyncpa [#allocation4 + $0x1], 1 }

</bundles_post_ra>
